<compile_context>
chip_gen: v6e
topology: v6e:2x2x1
jax: 0.10.0
libtpu: 0.0.40
codegen_flags: <defaults>
</compile_context>

<pallas_src>
import functools

import jax
import jax.numpy as jnp
from jax.experimental import pallas as pl
from jax.experimental.pallas import tpu as pltpu


NODE_TYPES = ('ind', 'org', 'ext')
TYPE_ID = {t: i for i, t in enumerate(NODE_TYPES)}

# conv1 relations (18), exactly as in the PyTorch module
RELS = [
    ('ind', 'txn', 'ind'), ('org', 'txn', 'ind'), ('ext', 'txn', 'ind'),
    ('ind', 'txn', 'org'), ('org', 'txn', 'org'), ('ext', 'txn', 'org'),
    ('ind', 'txn', 'ext'), ('org', 'txn', 'ext'),
    ('ind', 'role', 'org'),
    ('ind', 'rev_txn', 'ind'), ('org', 'rev_txn', 'ind'), ('ext', 'rev_txn', 'ind'),
    ('ind', 'rev_txn', 'org'), ('org', 'rev_txn', 'org'), ('ext', 'rev_txn', 'org'),
    ('ind', 'rev_txn', 'ext'), ('org', 'rev_txn', 'ext'),
    ('org', 'rev_role', 'ind'),
]
# conv2 has no relations targeting 'ext' (14 relations)
RELS_CONV2 = [r for r in RELS if r[2] != 'ext']


# ----------------------------------------------------------------------------
# Pre-pass kernel:  xw[t, r] = X[src_type(t, r)] @ W[t, r] + b[t, r]
# Slot r == R_MAX carries W = sum_r Wr_r and b = sum_r b_r with src = dst type, i.e. the
# relation-independent "base" term that initializes the main kernel's accumulator.
# ----------------------------------------------------------------------------
def _xw_prepass_kernel(src_ids_ref, x_ref, w_ref, b_ref, xw_ref):
    del src_ids_ref  # consumed only by the index_maps (scalar prefetch)
    xw_ref[...] = (
        jnp.dot(x_ref[...], w_ref[...], preferred_element_type=jnp.float32) + b_ref[...]
    ).astype(jnp.bfloat16)


def xw_prepass(src_ids, x_all, w_stack, b_stack, *, tile_n):
    """x_all: f32[3, N_pad, F_pad], w_stack: f32[T, R+1, F_pad, F_out],
    b_stack: f32[T, R+1, 1, F_out], src_ids: int32[T*(R+1)]  ->  bf16[T, R+1, N_pad, F_out]."""
    t_types, r1, f_pad, f_out = w_stack.shape
    n_pad = x_all.shape[1]
    grid = (t_types, r1, n_pad // tile_n)
    return pl.pallas_call(
        _xw_prepass_kernel,
        out_shape=jax.ShapeDtypeStruct((t_types, r1, n_pad, f_out), jnp.bfloat16),
        grid_spec=pltpu.PrefetchScalarGridSpec(
            num_scalar_prefetch=1,
            grid=grid,
            in_specs=[
                # source features selected by node-type id (scalar prefetch); relations are
                # grouped by source type so consecutive r steps hit the same block (no re-DMA)
                pl.BlockSpec((None, tile_n, f_pad),
                             lambda t, r, n, sid: (sid[t * r1 + r], n, 0)),
                pl.BlockSpec((None, None, f_pad, f_out), lambda t, r, n, sid: (t, r, 0, 0)),
                pl.BlockSpec((None, None, 1, f_out), lambda t, r, n, sid: (t, r, 0, 0)),
            ],
            out_specs=pl.BlockSpec((None, None, tile_n, f_out),
                                   lambda t, r, n, sid: (t, r, n, 0)),
        ),
        compiler_params=pltpu.CompilerParams(
            dimension_semantics=("parallel", "arbitrary", "arbitrary")),
    )(src_ids, x_all, w_stack, b_stack)


# ----------------------------------------------------------------------------
# Main fused layer kernel: one HeteroConv(SAGEConv, aggr='sum') + sigmoid per layer,
# all destination node types in one launch.
# ----------------------------------------------------------------------------
def _hetero_sage_kernel(rel_counts_ref, a_ref, xw_ref, base_ref, out_ref, acc_ref):
    t = pl.program_id(0)   # destination node type ('parallel')
    r = pl.program_id(2)   # relation slot (reduction, 'arbitrary')
    s = pl.program_id(3)   # source tile (reduction, 'arbitrary')

    @pl.when((r == 0) & (s == 0))
    def _init():
        # base = x_dst @ (sum_r Wr_r) + sum_r b_r, precomputed by the pre-pass (resident block)
        acc_ref[...] = base_ref[...].astype(jnp.float32)

    # Skip padded relation slots (zero adjacency anyway, but save the MXU work).
    @pl.when(r < rel_counts_ref[t])
    def _accum():
        acc_ref[...] += jnp.dot(a_ref[...], xw_ref[...],
                                preferred_element_type=jnp.float32)

    @pl.when((r == pl.num_programs(2) - 1) & (s == pl.num_programs(3) - 1))
    def _finalize():
        # Fused sigmoid epilogue; approx reciprocal runs on the otherwise-idle EUP slot.
        out_ref[...] = pl.reciprocal(1.0 + jnp.exp(-acc_ref[...]), approx=True)


def hetero_sage_layer(rel_counts, adj, xw, *, tile_dst, tile_src):
    """One fused HeteroConv(SAGEConv, aggr='sum') + sigmoid.

    rel_counts: int32[T]                     real relation count per destination type (prefetch)
    adj:        bf16[T, R, N_pad, N_pad]     dense row-normalized (mean) adjacency per relation
    xw:         bf16[T, R+1, N_pad, F_out]   pre-pass output; slot R is the base term
    returns     f32[T, N_pad, F_out]
    """
    t_types, r_max, n_pad, n_src_pad = adj.shape
    f_out = xw.shape[-1]
    base_slot = r_max
    grid = (t_types, n_pad // tile_dst, r_max, n_src_pad // tile_src)
    return pl.pallas_call(
        _hetero_sage_kernel,
        out_shape=jax.ShapeDtypeStruct((t_types, n_pad, f_out), jnp.float32),
        grid_spec=pltpu.PrefetchScalarGridSpec(
            num_scalar_prefetch=1,
            grid=grid,
            in_specs=[
                # A tile for this (dst type, relation, dst tile, src tile)
                pl.BlockSpec((None, None, tile_dst, tile_src),
                             lambda t, d, r, s, rc: (t, r, d, s)),
                # matching xw tile (relation slots only)
                pl.BlockSpec((None, None, tile_src, f_out),
                             lambda t, d, r, s, rc: (t, r, s, 0)),
                # base term (slot R of the same array): constant across r/s -> stays resident
                pl.BlockSpec((None, None, tile_dst, f_out),
                             lambda t, d, r, s, rc: (t, base_slot, d, 0)),
            ],
            out_specs=pl.BlockSpec((None, tile_dst, f_out),
                                   lambda t, d, r, s, rc: (t, d, 0)),
            scratch_shapes=[pltpu.VMEM((tile_dst, f_out), jnp.float32)],
        ),
        compiler_params=pltpu.CompilerParams(
            dimension_semantics=("parallel", "parallel", "arbitrary", "arbitrary")),
        # Production: set vmem_limit_bytes explicitly when raising tile_src/tile_dst
        # (64 MiB ceiling on v7x, 16 MiB default scoped limit on v5e).
    )(rel_counts, adj, xw, xw)


def sage_conv2_forward(x_all, pack1, pack2, *, tile_dst, tile_src, tile_n):
    # conv1 (all 3 destination types in one launch) + fused sigmoid
    xw1 = xw_prepass(pack1['src_ids'], x_all, pack1['w'], pack1['b'], tile_n=tile_n)
    h_all = hetero_sage_layer(pack1['rel_counts'], pack1['adj'], xw1,
                              tile_dst=tile_dst, tile_src=tile_src)      # f32[3, N_pad, F_pad]
    # conv2 (destination types ind, org) + fused sigmoid
    xw2 = xw_prepass(pack2['src_ids'], h_all, pack2['w'], pack2['b'], tile_n=tile_n)
    out2 = hetero_sage_layer(pack2['rel_counts'], pack2['adj'], xw2,
                             tile_dst=tile_dst, tile_src=tile_src)       # f32[2, N_pad, F_pad]
    # column 0 of the (padded) 1-dim output, still padded on the node axis
    return out2[0, :, 0], out2[1, :, 0]


# ----------------------------------------------------------------------------
# Glue: padding, dense mean-adjacency, deterministic parameters, packing
# ----------------------------------------------------------------------------
def round_up(x, m):
    return (x + m - 1) // m * m


def pad2(x, rows, cols):
    out = jnp.zeros((rows, cols), jnp.float32)
    return out.at[:x.shape[0], :x.shape[1]].set(x)


def build_mean_adj_padded(edge_index, n_pad):
    """Dense row-normalized adjacency A[d, s] = (#edges s->d) / in_degree(d), zero-padded."""
    src, dst = edge_index[0], edge_index[1]
    adj = jnp.zeros((n_pad, n_pad), jnp.float32).at[dst, src].add(1.0)
    deg = adj.sum(axis=1, keepdims=True)
    return adj / jnp.maximum(deg, 1.0)   # zero rows for 0-in-degree / padded dst nodes


def glorot(key, shape):
    fan_in, fan_out = shape
    lim = (6.0 / (fan_in + fan_out)) ** 0.5
    return jax.random.uniform(key, shape, jnp.float32, -lim, lim)


def init_layer_params(key, rels, feat_dims, out_dim_of):
    params = {}
    for i, rel in enumerate(rels):
        src, _, dst = rel
        k = jax.random.fold_in(key, i)
        k1, k2, k3 = jax.random.split(k, 3)
        d_out = out_dim_of(dst)
        params[rel] = dict(
            wl=glorot(k1, (feat_dims[src], d_out)),   # lin_l weight, stored [Fin, Fout]
            wr=glorot(k2, (feat_dims[dst], d_out)),   # lin_r weight, stored [Fin, Fout]
            b=jax.random.uniform(k3, (d_out,), jnp.float32, -0.1, 0.1),
        )
    return params


def build_layer_pack(dst_types, rels, rel_params, adj_pad, n_pad, f_pad, f_out):
    """Pack all relations of one HeteroConv layer (every destination type) for the fused kernels."""
    rel_lists, counts = [], []
    for dst in dst_types:
        # grouped by SOURCE node type -> consecutive pre-pass slots reuse the same source block
        rl = sorted([r for r in rels if r[2] == dst], key=lambda r: TYPE_ID[r[0]])
        rel_lists.append(rl)
        counts.append(len(rl))
    r_max = max(counts)

    zero_adj = jnp.zeros((n_pad, n_pad), jnp.float32)
    zero_w = jnp.zeros((f_pad, f_out), jnp.float32)
    zero_b = jnp.zeros((1, f_out), jnp.float32)

    adj_s, w_s, b_s, sid = [], [], [], []
    for dst, rl in zip(dst_types, rel_lists):
        n_dummy = r_max - len(rl)
        adj_s.append(jnp.stack([adj_pad[r] for r in rl] + [zero_adj] * n_dummy, 0))
        wr_sum = sum(pad2(rel_params[r]['wr'], f_pad, f_out) for r in rl)
        w_s.append(jnp.stack([pad2(rel_params[r]['wl'], f_pad, f_out) for r in rl]
                             + [zero_w] * n_dummy + [wr_sum], 0))
        b_sum = sum(rel_params[r]['b'] for r in rl)
        b_pad = jnp.zeros((1, f_out), jnp.float32).at[0, :b_sum.shape[0]].set(b_sum)
        b_s.append(jnp.stack([zero_b] * r_max + [b_pad], 0))
        sid.extend([TYPE_ID[r[0]] for r in rl] + [0] * n_dummy + [TYPE_ID[dst]])

    return dict(
        rel_counts=jnp.asarray(counts, jnp.int32),            # [T]
        src_ids=jnp.asarray(sid, jnp.int32),                  # [T*(R_max+1)], flattened for SMEM
        adj=jnp.stack(adj_s, 0).astype(jnp.bfloat16),          # [T, R_max, N_pad, N_pad]
        w=jnp.stack(w_s, 0),                                   # [T, R_max+1, F_pad, F_out] f32
        b=jnp.stack(b_s, 0),                                   # [T, R_max+1, 1, F_out]     f32
    )


# ----------------------------------------------------------------------------
# Main
# ----------------------------------------------------------------------------
if __name__ == "__main__":
    key = jax.random.PRNGKey(0)

    # small synthetic hetero graph
    num_nodes = {'ind': 12, 'org': 10, 'ext': 8}
    feat_dims = {'ind': 16, 'org': 8, 'ext': 12}
    num_edges = 32

    F_PAD = 128                                       # lane-dense padded feature / output dim
    N_PAD = round_up(max(num_nodes.values()), 16)     # 16; multiple of 16 for bf16 sublane packing
    TILE_DST = 16    # toy (full extent); production: 256-512 (v6e/v7x) / 128-256 (v5e)
    TILE_SRC = 16    # toy (full extent); production: 2048-4096 bf16 on v7x, ~2x on v6e
    TILE_N = 16      # pre-pass node tile

    # node features (padded lane-dense, stacked by node type for scalar-prefetch selection)
    kx = jax.random.fold_in(key, 1000)
    x_dict = {nt: jax.random.normal(jax.random.fold_in(kx, i),
                                    (num_nodes[nt], feat_dims[nt]), jnp.float32)
              for i, nt in enumerate(NODE_TYPES)}
    x_all = jnp.stack([pad2(x_dict[nt], N_PAD, F_PAD) for nt in NODE_TYPES], axis=0)

    # edge_index per relation
    ke = jax.random.fold_in(key, 2000)
    edge_index_dict = {}
    for i, rel in enumerate(RELS):
        s, _, d = rel
        k1, k2 = jax.random.split(jax.random.fold_in(ke, i))
        edge_index_dict[rel] = jnp.stack([
            jax.random.randint(k1, (num_edges,), 0, num_nodes[s]),
            jax.random.randint(k2, (num_edges,), 0, num_nodes[d])], axis=0)

    adj_pad = {rel: build_mean_adj_padded(edge_index_dict[rel], N_PAD) for rel in RELS}

    # deterministic parameters for conv1 / conv2
    kp = jax.random.fold_in(key, 3000)
    params1 = init_layer_params(jax.random.fold_in(kp, 1), RELS, feat_dims,
                                lambda dst: feat_dims[dst])
    params2 = init_layer_params(jax.random.fold_in(kp, 2), RELS_CONV2, feat_dims,
                                lambda dst: 1)

    pack1 = build_layer_pack(NODE_TYPES, RELS, params1, adj_pad, N_PAD, F_PAD, F_PAD)
    pack2 = build_layer_pack(('ind', 'org'), RELS_CONV2, params2, adj_pad, N_PAD, F_PAD, F_PAD)

    # run the fused Pallas forward (2 layer launches + 2 pre-pass launches)
    fwd = jax.jit(functools.partial(sage_conv2_forward,
                                    tile_dst=TILE_DST, tile_src=TILE_SRC, tile_n=TILE_N))
    pred_ind_pad, pred_org_pad = fwd(x_all, pack1, pack2)
    jax.block_until_ready((pred_ind_pad, pred_org_pad))
    pred_ind = pred_ind_pad[:num_nodes['ind']]
    pred_org = pred_org_pad[:num_nodes['org']]

    # pure-JAX f32 reference (unpadded) for a structural sanity check
    def reference_forward():
        adj = {r: adj_pad[r][:num_nodes[r[2]], :num_nodes[r[0]]] for r in RELS}

        def layer(xs, rels, lp):
            out = {}
            for rel in rels:
                s, _, d = rel
                p = lp[rel]
                y = (adj[rel] @ xs[s]) @ p['wl'] + xs[d] @ p['wr'] + p['b']
                out[d] = y if d not in out else out[d] + y
            return out

        h = {k: jax.nn.sigmoid(v) for k, v in layer(x_dict, RELS, params1).items()}
        h2 = layer(h, RELS_CONV2, params2)
        return jax.nn.sigmoid(h2['ind'])[:, 0], jax.nn.sigmoid(h2['org'])[:, 0]

    ref_ind, ref_org = reference_forward()

    assert pred_ind.shape == (num_nodes['ind'],)
    assert pred_org.shape == (num_nodes['org'],)
    assert bool(jnp.all(jnp.isfinite(pred_ind))) and bool(jnp.all(jnp.isfinite(pred_org)))
    # tolerance covers bf16 operand storage (A, XW, base) + approx sigmoid reciprocal;
    # expected max deviation from the f32 reference is ~1e-2 through the two layers.
    assert bool(jnp.max(jnp.abs(pred_ind - ref_ind)) < 5e-2)
    assert bool(jnp.max(jnp.abs(pred_org - ref_org)) < 5e-2)
    print("KERNEL_OK")
</pallas_src>

<mosaic_0001>
module attributes {stable_mosaic.version = 11 : i64} {
  func.func @_xw_prepass_kernel(%arg0: i32, %arg1: i32, %arg2: i32, %arg3: memref<24xi32, #tpu.memory_space<smem>>, %arg4: memref<1x16x128xf32, #tpu.memory_space<vmem>>, %arg5: memref<1x1x128x128xf32, #tpu.memory_space<vmem>>, %arg6: memref<1x1x1x128xf32, #tpu.memory_space<vmem>>, %arg7: memref<1x1x16x128xbf16, #tpu.memory_space<vmem>>) attributes {dimension_semantics = [#tpu.dimension_semantics<parallel>, #tpu.dimension_semantics<arbitrary>, #tpu.dimension_semantics<arbitrary>], iteration_bounds = array<i64: 3, 8, 1>, scalar_prefetch = 1 : i64, scratch_operands = 0 : i64, tpu.core_type = #tpu.core_type<tc>, window_params = [{transform_indices = @transform_0, window_bounds = array<i64: 1, 16, 128>}, {transform_indices = @transform_1, window_bounds = array<i64: 1, 1, 128, 128>}, {transform_indices = @transform_2, window_bounds = array<i64: 1, 1, 1, 128>}, {transform_indices = @transform_3, window_bounds = array<i64: 1, 1, 16, 128>}]} {
    %c0 = arith.constant 0 : index
    %c0_0 = arith.constant 0 : index
    %c0_1 = arith.constant 0 : index
    %0 = vector.load %arg4[%c0, %c0_0, %c0_1] : memref<1x16x128xf32, #tpu.memory_space<vmem>>, vector<1x16x128xf32>
    %1 = vector.shape_cast %0 : vector<1x16x128xf32> to vector<16x128xf32>
    %c0_2 = arith.constant 0 : index
    %c0_3 = arith.constant 0 : index
    %c0_4 = arith.constant 0 : index
    %c0_5 = arith.constant 0 : index
    %2 = vector.load %arg5[%c0_2, %c0_3, %c0_4, %c0_5] : memref<1x1x128x128xf32, #tpu.memory_space<vmem>>, vector<1x1x128x128xf32>
    %3 = vector.shape_cast %2 : vector<1x1x128x128xf32> to vector<128x128xf32>
    %cst = arith.constant dense<0.000000e+00> : vector<16x128xf32>
    %4 = tpu.matmul %1, %3, %cst {dimension_numbers = #tpu.dot_dimension_numbers<[1], [0], [0], [1], [0, 0, 1, 1], [], []>} : vector<16x128xf32>, vector<128x128xf32>, vector<16x128xf32> -> vector<16x128xf32>
    %c0_6 = arith.constant 0 : index
    %c0_7 = arith.constant 0 : index
    %c0_8 = arith.constant 0 : index
    %c0_9 = arith.constant 0 : index
    %5 = vector.load %arg6[%c0_6, %c0_7, %c0_8, %c0_9] : memref<1x1x1x128xf32, #tpu.memory_space<vmem>>, vector<1x1x1x128xf32>
    %6 = vector.shape_cast %5 : vector<1x1x1x128xf32> to vector<1x128xf32>
    %7 = vector.broadcast %6 : vector<1x128xf32> to vector<16x128xf32>
    %8 = arith.addf %4, %7 : vector<16x128xf32>
    %9 = arith.truncf %8 : vector<16x128xf32> to vector<16x128xbf16>
    %c0_10 = arith.constant 0 : index
    %c0_11 = arith.constant 0 : index
    %c0_12 = arith.constant 0 : index
    %c0_13 = arith.constant 0 : index
    %10 = vector.load %arg7[%c0_10, %c0_11, %c0_12, %c0_13] : memref<1x1x16x128xbf16, #tpu.memory_space<vmem>>, vector<1x1x16x128xbf16>
    %11 = vector.shape_cast %10 : vector<1x1x16x128xbf16> to vector<16x128xbf16>
    %12 = vector.shape_cast %9 : vector<16x128xbf16> to vector<1x1x16x128xbf16>
    tpu.vector_store %arg7[%c0_10, %c0_11, %c0_12, %c0_13], %12 {strides = array<i32>} : memref<1x1x16x128xbf16, #tpu.memory_space<vmem>>, vector<1x1x16x128xbf16>,
    return
  }
  func.func @transform_0(%arg0: i32, %arg1: i32, %arg2: i32, %arg3: memref<24xi32, #tpu.memory_space<smem>>) -> (i32, i32, i32) {
    %c8_i32 = arith.constant 8 : i32
    %0 = arith.muli %arg0, %c8_i32 : i32
    %1 = arith.addi %0, %arg1 : i32
    %2 = arith.index_cast %1 : i32 to index
    %3 = memref.load %arg3[%2] : memref<24xi32, #tpu.memory_space<smem>>
    %c0_i32 = arith.constant 0 : i32
    %c0_i32_0 = arith.constant 0 : i32
    return %3, %arg2, %c0_i32 : i32, i32, i32
  }
  func.func @transform_1(%arg0: i32, %arg1: i32, %arg2: i32, %arg3: memref<24xi32, #tpu.memory_space<smem>>) -> (i32, i32, i32, i32) {
    %c0_i32 = arith.constant 0 : i32
    %c0_i32_0 = arith.constant 0 : i32
    %c0_i32_1 = arith.constant 0 : i32
    return %arg0, %arg1, %c0_i32, %c0_i32_0 : i32, i32, i32, i32
  }
  func.func @transform_2(%arg0: i32, %arg1: i32, %arg2: i32, %arg3: memref<24xi32, #tpu.memory_space<smem>>) -> (i32, i32, i32, i32) {
    %c0_i32 = arith.constant 0 : i32
    %c0_i32_0 = arith.constant 0 : i32
    %c0_i32_1 = arith.constant 0 : i32
    return %arg0, %arg1, %c0_i32, %c0_i32_0 : i32, i32, i32, i32
  }
  func.func @transform_3(%arg0: i32, %arg1: i32, %arg2: i32, %arg3: memref<24xi32, #tpu.memory_space<smem>>) -> (i32, i32, i32, i32) {
    %c0_i32 = arith.constant 0 : i32
    %c0_i32_0 = arith.constant 0 : i32
    return %arg0, %arg1, %arg2, %c0_i32 : i32, i32, i32, i32
  }
}

module attributes {stable_mosaic.version = 11 : i64} {
  func.func @_hetero_sage_kernel(%arg0: i32, %arg1: i32, %arg2: i32, %arg3: i32, %arg4: memref<2xi32, #tpu.memory_space<smem>>, %arg5: memref<1x1x16x16xbf16, #tpu.memory_space<vmem>>, %arg6: memref<1x1x16x128xbf16, #tpu.memory_space<vmem>>, %arg7: memref<1x1x16x128xbf16, #tpu.memory_space<vmem>>, %arg8: memref<1x16x128xf32, #tpu.memory_space<vmem>>, %arg9: memref<16x128xf32, #tpu.memory_space<vmem>>) attributes {dimension_semantics = [#tpu.dimension_semantics<parallel>, #tpu.dimension_semantics<parallel>, #tpu.dimension_semantics<arbitrary>, #tpu.dimension_semantics<arbitrary>], iteration_bounds = array<i64: 2, 1, 7, 1>, scalar_prefetch = 1 : i64, scratch_operands = 1 : i64, tpu.core_type = #tpu.core_type<tc>, window_params = [{transform_indices = @transform_0, window_bounds = array<i64: 1, 1, 16, 16>}, {transform_indices = @transform_1, window_bounds = array<i64: 1, 1, 16, 128>}, {transform_indices = @transform_2, window_bounds = array<i64: 1, 1, 16, 128>}, {transform_indices = @transform_3, window_bounds = array<i64: 1, 16, 128>}]} {
    %c0_i32 = arith.constant 0 : i32
    %0 = arith.cmpi eq, %arg2, %c0_i32 : i32
    %c0_i32_0 = arith.constant 0 : i32
    %1 = arith.cmpi eq, %arg3, %c0_i32_0 : i32
    %2 = arith.andi %0, %1 : i1
    %3 = arith.extui %2 : i1 to i32
    %c0_i32_1 = arith.constant 0 : i32
    %4 = arith.cmpi ne, %3, %c0_i32_1 : i32
    scf.if %4 {
      %c0 = arith.constant 0 : index
      %c0_5 = arith.constant 0 : index
      %c0_6 = arith.constant 0 : index
      %c0_7 = arith.constant 0 : index
      %15 = vector.load %arg7[%c0, %c0_5, %c0_6, %c0_7] : memref<1x1x16x128xbf16, #tpu.memory_space<vmem>>, vector<1x1x16x128xbf16>
      %16 = vector.shape_cast %15 : vector<1x1x16x128xbf16> to vector<16x128xbf16>
      %17 = arith.extf %16 : vector<16x128xbf16> to vector<16x128xf32>
      %c0_8 = arith.constant 0 : index
      %c0_9 = arith.constant 0 : index
      %18 = vector.load %arg9[%c0_8, %c0_9] : memref<16x128xf32, #tpu.memory_space<vmem>>, vector<16x128xf32>
      tpu.vector_store %arg9[%c0_8, %c0_9], %17 {strides = array<i32>} : memref<16x128xf32, #tpu.memory_space<vmem>>, vector<16x128xf32>,
    } else {
    }
    %5 = arith.index_cast %arg0 : i32 to index
    %6 = memref.load %arg4[%5] : memref<2xi32, #tpu.memory_space<smem>>
    %7 = arith.cmpi slt, %arg2, %6 : i32
    %8 = arith.extui %7 : i1 to i32
    %c0_i32_2 = arith.constant 0 : i32
    %9 = arith.cmpi ne, %8, %c0_i32_2 : i32
    scf.if %9 {
      %c0 = arith.constant 0 : index
      %c0_5 = arith.constant 0 : index
      %15 = vector.load %arg9[%c0, %c0_5] : memref<16x128xf32, #tpu.memory_space<vmem>>, vector<16x128xf32>
      %c0_6 = arith.constant 0 : index
      %c0_7 = arith.constant 0 : index
      %c0_8 = arith.constant 0 : index
      %c0_9 = arith.constant 0 : index
      %16 = vector.load %arg5[%c0_6, %c0_7, %c0_8, %c0_9] : memref<1x1x16x16xbf16, #tpu.memory_space<vmem>>, vector<1x1x16x16xbf16>
      %17 = vector.shape_cast %16 : vector<1x1x16x16xbf16> to vector<16x16xbf16>
      %c0_10 = arith.constant 0 : index
      %c0_11 = arith.constant 0 : index
      %c0_12 = arith.constant 0 : index
      %c0_13 = arith.constant 0 : index
      %18 = vector.load %arg6[%c0_10, %c0_11, %c0_12, %c0_13] : memref<1x1x16x128xbf16, #tpu.memory_space<vmem>>, vector<1x1x16x128xbf16>
      %19 = vector.shape_cast %18 : vector<1x1x16x128xbf16> to vector<16x128xbf16>
      %cst = arith.constant dense<0.000000e+00> : vector<16x128xf32>
      %20 = tpu.matmul %17, %19, %cst {dimension_numbers = #tpu.dot_dimension_numbers<[1], [0], [0], [1], [0, 0, 1, 1], [], []>} : vector<16x16xbf16>, vector<16x128xbf16>, vector<16x128xf32> -> vector<16x128xf32>
      %21 = arith.addf %15, %20 : vector<16x128xf32>
      %c0_14 = arith.constant 0 : index
      %c0_15 = arith.constant 0 : index
      %22 = vector.load %arg9[%c0_14, %c0_15] : memref<16x128xf32, #tpu.memory_space<vmem>>, vector<16x128xf32>
      tpu.vector_store %arg9[%c0_14, %c0_15], %21 {strides = array<i32>} : memref<16x128xf32, #tpu.memory_space<vmem>>, vector<16x128xf32>,
    } else {
    }
    %c6_i32 = arith.constant 6 : i32
    %10 = arith.cmpi eq, %arg2, %c6_i32 : i32
    %c0_i32_3 = arith.constant 0 : i32
    %11 = arith.cmpi eq, %arg3, %c0_i32_3 : i32
    %12 = arith.andi %10, %11 : i1
    %13 = arith.extui %12 : i1 to i32
    %c0_i32_4 = arith.constant 0 : i32
    %14 = arith.cmpi ne, %13, %c0_i32_4 : i32
    scf.if %14 {
      %c0 = arith.constant 0 : index
      %c0_5 = arith.constant 0 : index
      %15 = vector.load %arg9[%c0, %c0_5] : memref<16x128xf32, #tpu.memory_space<vmem>>, vector<16x128xf32>
      %cst = arith.constant 0.000000e+00 : f32
      %16 = vector.broadcast %cst : f32 to vector<16x128xf32>
      %17 = arith.subf %16, %15 : vector<16x128xf32>
      %18 = math.exp %17 : vector<16x128xf32>
      %cst_6 = arith.constant 1.000000e+00 : f32
      %19 = vector.broadcast %cst_6 : f32 to vector<16x128xf32>
      %20 = arith.addf %19, %18 : vector<16x128xf32>
      %21 = tpu.reciprocal %20 {approx = true} : vector<16x128xf32> -> vector<16x128xf32>
      %c0_7 = arith.constant 0 : index
      %c0_8 = arith.constant 0 : index
      %c0_9 = arith.constant 0 : index
      %22 = vector.load %arg8[%c0_7, %c0_8, %c0_9] : memref<1x16x128xf32, #tpu.memory_space<vmem>>, vector<1x16x128xf32>
      %23 = vector.shape_cast %22 : vector<1x16x128xf32> to vector<16x128xf32>
      %24 = vector.shape_cast %21 : vector<16x128xf32> to vector<1x16x128xf32>
      tpu.vector_store %arg8[%c0_7, %c0_8, %c0_9], %24 {strides = array<i32>} : memref<1x16x128xf32, #tpu.memory_space<vmem>>, vector<1x16x128xf32>,
    } else {
    }
    return
  }
  func.func @transform_0(%arg0: i32, %arg1: i32, %arg2: i32, %arg3: i32, %arg4: memref<2xi32, #tpu.memory_space<smem>>) -> (i32, i32, i32, i32) {
    %c0_i32 = arith.constant 0 : i32
    return %arg0, %arg2, %arg1, %arg3 : i32, i32, i32, i32
  }
  func.func @transform_1(%arg0: i32, %arg1: i32, %arg2: i32, %arg3: i32, %arg4: memref<2xi32, #tpu.memory_space<smem>>) -> (i32, i32, i32, i32) {
    %c0_i32 = arith.constant 0 : i32
    %c0_i32_0 = arith.constant 0 : i32
    return %arg0, %arg2, %arg3, %c0_i32 : i32, i32, i32, i32
  }
  func.func @transform_2(%arg0: i32, %arg1: i32, %arg2: i32, %arg3: i32, %arg4: memref<2xi32, #tpu.memory_space<smem>>) -> (i32, i32, i32, i32) {
    %c7_i32 = arith.constant 7 : i32
    %c0_i32 = arith.constant 0 : i32
    %c0_i32_0 = arith.constant 0 : i32
    return %arg0, %c7_i32, %arg1, %c0_i32 : i32, i32, i32, i32
  }
  func.func @transform_3(%arg0: i32, %arg1: i32, %arg2: i32, %arg3: i32, %arg4: memref<2xi32, #tpu.memory_space<smem>>) -> (i32, i32, i32) {
    %c0_i32 = arith.constant 0 : i32
    %c0_i32_0 = arith.constant 0 : i32
    return %arg0, %arg1, %c0_i32 : i32, i32, i32
  }
}

module attributes {stable_mosaic.version = 11 : i64} {
  func.func @_xw_prepass_kernel(%arg0: i32, %arg1: i32, %arg2: i32, %arg3: memref<16xi32, #tpu.memory_space<smem>>, %arg4: memref<1x16x128xf32, #tpu.memory_space<vmem>>, %arg5: memref<1x1x128x128xf32, #tpu.memory_space<vmem>>, %arg6: memref<1x1x1x128xf32, #tpu.memory_space<vmem>>, %arg7: memref<1x1x16x128xbf16, #tpu.memory_space<vmem>>) attributes {dimension_semantics = [#tpu.dimension_semantics<parallel>, #tpu.dimension_semantics<arbitrary>, #tpu.dimension_semantics<arbitrary>], iteration_bounds = array<i64: 2, 8, 1>, scalar_prefetch = 1 : i64, scratch_operands = 0 : i64, tpu.core_type = #tpu.core_type<tc>, window_params = [{transform_indices = @transform_0, window_bounds = array<i64: 1, 16, 128>}, {transform_indices = @transform_1, window_bounds = array<i64: 1, 1, 128, 128>}, {transform_indices = @transform_2, window_bounds = array<i64: 1, 1, 1, 128>}, {transform_indices = @transform_3, window_bounds = array<i64: 1, 1, 16, 128>}]} {
    %c0 = arith.constant 0 : index
    %c0_0 = arith.constant 0 : index
    %c0_1 = arith.constant 0 : index
    %0 = vector.load %arg4[%c0, %c0_0, %c0_1] : memref<1x16x128xf32, #tpu.memory_space<vmem>>, vector<1x16x128xf32>
    %1 = vector.shape_cast %0 : vector<1x16x128xf32> to vector<16x128xf32>
    %c0_2 = arith.constant 0 : index
    %c0_3 = arith.constant 0 : index
    %c0_4 = arith.constant 0 : index
    %c0_5 = arith.constant 0 : index
    %2 = vector.load %arg5[%c0_2, %c0_3, %c0_4, %c0_5] : memref<1x1x128x128xf32, #tpu.memory_space<vmem>>, vector<1x1x128x128xf32>
    %3 = vector.shape_cast %2 : vector<1x1x128x128xf32> to vector<128x128xf32>
    %cst = arith.constant dense<0.000000e+00> : vector<16x128xf32>
    %4 = tpu.matmul %1, %3, %cst {dimension_numbers = #tpu.dot_dimension_numbers<[1], [0], [0], [1], [0, 0, 1, 1], [], []>} : vector<16x128xf32>, vector<128x128xf32>, vector<16x128xf32> -> vector<16x128xf32>
    %c0_6 = arith.constant 0 : index
    %c0_7 = arith.constant 0 : index
    %c0_8 = arith.constant 0 : index
    %c0_9 = arith.constant 0 : index
    %5 = vector.load %arg6[%c0_6, %c0_7, %c0_8, %c0_9] : memref<1x1x1x128xf32, #tpu.memory_space<vmem>>, vector<1x1x1x128xf32>
    %6 = vector.shape_cast %5 : vector<1x1x1x128xf32> to vector<1x128xf32>
    %7 = vector.broadcast %6 : vector<1x128xf32> to vector<16x128xf32>
    %8 = arith.addf %4, %7 : vector<16x128xf32>
    %9 = arith.truncf %8 : vector<16x128xf32> to vector<16x128xbf16>
    %c0_10 = arith.constant 0 : index
    %c0_11 = arith.constant 0 : index
    %c0_12 = arith.constant 0 : index
    %c0_13 = arith.constant 0 : index
    %10 = vector.load %arg7[%c0_10, %c0_11, %c0_12, %c0_13] : memref<1x1x16x128xbf16, #tpu.memory_space<vmem>>, vector<1x1x16x128xbf16>
    %11 = vector.shape_cast %10 : vector<1x1x16x128xbf16> to vector<16x128xbf16>
    %12 = vector.shape_cast %9 : vector<16x128xbf16> to vector<1x1x16x128xbf16>
    tpu.vector_store %arg7[%c0_10, %c0_11, %c0_12, %c0_13], %12 {strides = array<i32>} : memref<1x1x16x128xbf16, #tpu.memory_space<vmem>>, vector<1x1x16x128xbf16>,
    return
  }
  func.func @transform_0(%arg0: i32, %arg1: i32, %arg2: i32, %arg3: memref<16xi32, #tpu.memory_space<smem>>) -> (i32, i32, i32) {
    %c8_i32 = arith.constant 8 : i32
    %0 = arith.muli %arg0, %c8_i32 : i32
    %1 = arith.addi %0, %arg1 : i32
    %2 = arith.index_cast %1 : i32 to index
    %3 = memref.load %arg3[%2] : memref<16xi32, #tpu.memory_space<smem>>
    %c0_i32 = arith.constant 0 : i32
    %c0_i32_0 = arith.constant 0 : i32
    return %3, %arg2, %c0_i32 : i32, i32, i32
  }
  func.func @transform_1(%arg0: i32, %arg1: i32, %arg2: i32, %arg3: memref<16xi32, #tpu.memory_space<smem>>) -> (i32, i32, i32, i32) {
    %c0_i32 = arith.constant 0 : i32
    %c0_i32_0 = arith.constant 0 : i32
    %c0_i32_1 = arith.constant 0 : i32
    return %arg0, %arg1, %c0_i32, %c0_i32_0 : i32, i32, i32, i32
  }
  func.func @transform_2(%arg0: i32, %arg1: i32, %arg2: i32, %arg3: memref<16xi32, #tpu.memory_space<smem>>) -> (i32, i32, i32, i32) {
    %c0_i32 = arith.constant 0 : i32
    %c0_i32_0 = arith.constant 0 : i32
    %c0_i32_1 = arith.constant 0 : i32
    return %arg0, %arg1, %c0_i32, %c0_i32_0 : i32, i32, i32, i32
  }
  func.func @transform_3(%arg0: i32, %arg1: i32, %arg2: i32, %arg3: memref<16xi32, #tpu.memory_space<smem>>) -> (i32, i32, i32, i32) {
    %c0_i32 = arith.constant 0 : i32
    %c0_i32_0 = arith.constant 0 : i32
    return %arg0, %arg1, %arg2, %c0_i32 : i32, i32, i32, i32
  }
}

module attributes {stable_mosaic.version = 11 : i64} {
  func.func @_hetero_sage_kernel(%arg0: i32, %arg1: i32, %arg2: i32, %arg3: i32, %arg4: memref<3xi32, #tpu.memory_space<smem>>, %arg5: memref<1x1x16x16xbf16, #tpu.memory_space<vmem>>, %arg6: memref<1x1x16x128xbf16, #tpu.memory_space<vmem>>, %arg7: memref<1x1x16x128xbf16, #tpu.memory_space<vmem>>, %arg8: memref<1x16x128xf32, #tpu.memory_space<vmem>>, %arg9: memref<16x128xf32, #tpu.memory_space<vmem>>) attributes {dimension_semantics = [#tpu.dimension_semantics<parallel>, #tpu.dimension_semantics<parallel>, #tpu.dimension_semantics<arbitrary>, #tpu.dimension_semantics<arbitrary>], iteration_bounds = array<i64: 3, 1, 7, 1>, scalar_prefetch = 1 : i64, scratch_operands = 1 : i64, tpu.core_type = #tpu.core_type<tc>, window_params = [{transform_indices = @transform_0, window_bounds = array<i64: 1, 1, 16, 16>}, {transform_indices = @transform_1, window_bounds = array<i64: 1, 1, 16, 128>}, {transform_indices = @transform_2, window_bounds = array<i64: 1, 1, 16, 128>}, {transform_indices = @transform_3, window_bounds = array<i64: 1, 16, 128>}]} {
    %c0_i32 = arith.constant 0 : i32
    %0 = arith.cmpi eq, %arg2, %c0_i32 : i32
    %c0_i32_0 = arith.constant 0 : i32
    %1 = arith.cmpi eq, %arg3, %c0_i32_0 : i32
    %2 = arith.andi %0, %1 : i1
    %3 = arith.extui %2 : i1 to i32
    %c0_i32_1 = arith.constant 0 : i32
    %4 = arith.cmpi ne, %3, %c0_i32_1 : i32
    scf.if %4 {
      %c0 = arith.constant 0 : index
      %c0_5 = arith.constant 0 : index
      %c0_6 = arith.constant 0 : index
      %c0_7 = arith.constant 0 : index
      %15 = vector.load %arg7[%c0, %c0_5, %c0_6, %c0_7] : memref<1x1x16x128xbf16, #tpu.memory_space<vmem>>, vector<1x1x16x128xbf16>
      %16 = vector.shape_cast %15 : vector<1x1x16x128xbf16> to vector<16x128xbf16>
      %17 = arith.extf %16 : vector<16x128xbf16> to vector<16x128xf32>
      %c0_8 = arith.constant 0 : index
      %c0_9 = arith.constant 0 : index
      %18 = vector.load %arg9[%c0_8, %c0_9] : memref<16x128xf32, #tpu.memory_space<vmem>>, vector<16x128xf32>
      tpu.vector_store %arg9[%c0_8, %c0_9], %17 {strides = array<i32>} : memref<16x128xf32, #tpu.memory_space<vmem>>, vector<16x128xf32>,
    } else {
    }
    %5 = arith.index_cast %arg0 : i32 to index
    %6 = memref.load %arg4[%5] : memref<3xi32, #tpu.memory_space<smem>>
    %7 = arith.cmpi slt, %arg2, %6 : i32
    %8 = arith.extui %7 : i1 to i32
    %c0_i32_2 = arith.constant 0 : i32
    %9 = arith.cmpi ne, %8, %c0_i32_2 : i32
    scf.if %9 {
      %c0 = arith.constant 0 : index
      %c0_5 = arith.constant 0 : index
      %15 = vector.load %arg9[%c0, %c0_5] : memref<16x128xf32, #tpu.memory_space<vmem>>, vector<16x128xf32>
      %c0_6 = arith.constant 0 : index
      %c0_7 = arith.constant 0 : index
      %c0_8 = arith.constant 0 : index
      %c0_9 = arith.constant 0 : index
      %16 = vector.load %arg5[%c0_6, %c0_7, %c0_8, %c0_9] : memref<1x1x16x16xbf16, #tpu.memory_space<vmem>>, vector<1x1x16x16xbf16>
      %17 = vector.shape_cast %16 : vector<1x1x16x16xbf16> to vector<16x16xbf16>
      %c0_10 = arith.constant 0 : index
      %c0_11 = arith.constant 0 : index
      %c0_12 = arith.constant 0 : index
      %c0_13 = arith.constant 0 : index
      %18 = vector.load %arg6[%c0_10, %c0_11, %c0_12, %c0_13] : memref<1x1x16x128xbf16, #tpu.memory_space<vmem>>, vector<1x1x16x128xbf16>
      %19 = vector.shape_cast %18 : vector<1x1x16x128xbf16> to vector<16x128xbf16>
      %cst = arith.constant dense<0.000000e+00> : vector<16x128xf32>
      %20 = tpu.matmul %17, %19, %cst {dimension_numbers = #tpu.dot_dimension_numbers<[1], [0], [0], [1], [0, 0, 1, 1], [], []>} : vector<16x16xbf16>, vector<16x128xbf16>, vector<16x128xf32> -> vector<16x128xf32>
      %21 = arith.addf %15, %20 : vector<16x128xf32>
      %c0_14 = arith.constant 0 : index
      %c0_15 = arith.constant 0 : index
      %22 = vector.load %arg9[%c0_14, %c0_15] : memref<16x128xf32, #tpu.memory_space<vmem>>, vector<16x128xf32>
      tpu.vector_store %arg9[%c0_14, %c0_15], %21 {strides = array<i32>} : memref<16x128xf32, #tpu.memory_space<vmem>>, vector<16x128xf32>,
    } else {
    }
    %c6_i32 = arith.constant 6 : i32
    %10 = arith.cmpi eq, %arg2, %c6_i32 : i32
    %c0_i32_3 = arith.constant 0 : i32
    %11 = arith.cmpi eq, %arg3, %c0_i32_3 : i32
    %12 = arith.andi %10, %11 : i1
    %13 = arith.extui %12 : i1 to i32
    %c0_i32_4 = arith.constant 0 : i32
    %14 = arith.cmpi ne, %13, %c0_i32_4 : i32
    scf.if %14 {
      %c0 = arith.constant 0 : index
      %c0_5 = arith.constant 0 : index
      %15 = vector.load %arg9[%c0, %c0_5] : memref<16x128xf32, #tpu.memory_space<vmem>>, vector<16x128xf32>
      %cst = arith.constant 0.000000e+00 : f32
      %16 = vector.broadcast %cst : f32 to vector<16x128xf32>
      %17 = arith.subf %16, %15 : vector<16x128xf32>
      %18 = math.exp %17 : vector<16x128xf32>
      %cst_6 = arith.constant 1.000000e+00 : f32
      %19 = vector.broadcast %cst_6 : f32 to vector<16x128xf32>
      %20 = arith.addf %19, %18 : vector<16x128xf32>
      %21 = tpu.reciprocal %20 {approx = true} : vector<16x128xf32> -> vector<16x128xf32>
      %c0_7 = arith.constant 0 : index
      %c0_8 = arith.constant 0 : index
      %c0_9 = arith.constant 0 : index
      %22 = vector.load %arg8[%c0_7, %c0_8, %c0_9] : memref<1x16x128xf32, #tpu.memory_space<vmem>>, vector<1x16x128xf32>
      %23 = vector.shape_cast %22 : vector<1x16x128xf32> to vector<16x128xf32>
      %24 = vector.shape_cast %21 : vector<16x128xf32> to vector<1x16x128xf32>
      tpu.vector_store %arg8[%c0_7, %c0_8, %c0_9], %24 {strides = array<i32>} : memref<1x16x128xf32, #tpu.memory_space<vmem>>, vector<1x16x128xf32>,
    } else {
    }
    return
  }
  func.func @transform_0(%arg0: i32, %arg1: i32, %arg2: i32, %arg3: i32, %arg4: memref<3xi32, #tpu.memory_space<smem>>) -> (i32, i32, i32, i32) {
    %c0_i32 = arith.constant 0 : i32
    return %arg0, %arg2, %arg1, %arg3 : i32, i32, i32, i32
  }
  func.func @transform_1(%arg0: i32, %arg1: i32, %arg2: i32, %arg3: i32, %arg4: memref<3xi32, #tpu.memory_space<smem>>) -> (i32, i32, i32, i32) {
    %c0_i32 = arith.constant 0 : i32
    %c0_i32_0 = arith.constant 0 : i32
    return %arg0, %arg2, %arg3, %c0_i32 : i32, i32, i32, i32
  }
  func.func @transform_2(%arg0: i32, %arg1: i32, %arg2: i32, %arg3: i32, %arg4: memref<3xi32, #tpu.memory_space<smem>>) -> (i32, i32, i32, i32) {
    %c7_i32 = arith.constant 7 : i32
    %c0_i32 = arith.constant 0 : i32
    %c0_i32_0 = arith.constant 0 : i32
    return %arg0, %c7_i32, %arg1, %c0_i32 : i32, i32, i32, i32
  }
  func.func @transform_3(%arg0: i32, %arg1: i32, %arg2: i32, %arg3: i32, %arg4: memref<3xi32, #tpu.memory_space<smem>>) -> (i32, i32, i32) {
    %c0_i32 = arith.constant 0 : i32
    %c0_i32_0 = arith.constant 0 : i32
    return %arg0, %arg1, %c0_i32 : i32, i32, i32
  }
}

</mosaic_0001>

<bundles_post_ra>
// kernel: sage_conv2_forward.4
= control target key start
LH: loop header
LB: loop body
LE: loop exit
PB: predicated region body
PF: predicated region fallthrough
CT: control target
= control target key end

     0   :  { %s994_s15 = smov [#allocation3]   ;;  %s1323_s0 = inlined_call_operand.hbm [shape: s32[24], index: 0, kind: input, shape index: {}]   ;;  %s1324_s1 = inlined_call_operand.hbm [shape: f32[3,16,128], index: 1, kind: input, shape index: {}]   ;;  %s1325_s2 = inlined_call_operand.hbm [shape: f32[3,8,128,128], index: 2, kind: input, shape index: {}]   ;;  %s1326_s3 = inlined_call_operand.hbm [shape: f32[3,8,1,128], index: 3, kind: input, shape index: {}]   ;;  %s1327_s4 = inlined_call_operand.vmem [shape: bf16[3,8,16,128], index: 4, kind: output, shape index: {}]  }
   0x1   :  { %1342 = sst [smem:[#allocation21_spill]] %s1325_s2 }
   0x2   :  { %1343 = sst [smem:[#allocation22_spill]] %s1327_s4 }
   0x3   :  { %10 = dma.hbm_to_smem %s1323_s0, 16, %s994_s15, [#allocation2] }
   0x4   :  { %940 = dma.done.wait [#allocation2], 16 }
   0x5   :  { %941 = vsyncadd [#allocation2], 4294967280 }
   0x6   :  { %12 = sfence }
   0x7   :  { %13 = vsyncpa [#allocation5], 0 }
   0x8   :  { %15 = vsyncpa [#allocation5 + $0x1], 0 }
   0x9   :  { %16 = vsyncpa [#allocation7], 0 }
   0xa   :  { %18 = vsyncpa [#allocation7 + $0x1], 0  ;;  %s1028_s18 = smov 0   ;;  %s1030_s19 = smov 0  }
   0xb   :  { %s1032_s20 = smov 0   ;;  %s1034_s21 = smov 0  }
   0xc   :  { %s1036_s22 = smov 0   ;;  %s1038_s23 = smov 0  }
   0xd   :  { %s1040_s0 = smov 0   ;;  %s1042_s24 = smov 0  }
   0xe   :  { %s1044_s25 = smov 0   ;;  %s1046_s26 = smov 0  }
   0xf   :  { %s1048_s27 = smov 0  }
  0x10 LB: > { %1344 = sst [smem:[#allocation14_spill]] %s976_s0  ;;  %s39_s28 = sadd.s32 1, %s984_s25  ;;  %s992_s27 = sphi %s1048_s27, %s24_s27   ;;  %s988_s26 = sphi %s1046_s26, %s1377_s26   ;;  %s984_s25 = sphi %s1044_s25, %s1376_s25   ;;  %s980_s24 = sphi %s1042_s24, %s1375_s24   ;;  %s976_s0 = sphi %s1040_s0, %s1374_s0   ;;  %s972_s23 = sphi %s1038_s23, %s1383_s23   ;;  %s968_s22 = sphi %s1036_s22, %s1382_s22   ;;  %s964_s21 = sphi %s1034_s21, %s1381_s21   ;;  %s960_s20 = sphi %s1032_s20, %s1380_s20   ;;  %s956_s19 = sphi %s1030_s19, %s1379_s19   ;;  %s952_s18 = sphi %s1028_s18, %s1378_s18  }
  0x11   : > { %1345 = sst [smem:[#allocation15_spill]] %s980_s24  ;;  %p41_p0 = scmp.ge.s32.totalorder %s39_s28, 8 }
  0x12   : > { %1346 = sst [smem:[#allocation16_spill]] %s984_s25  ;;  %s43_s29 = sadd.s32 1, %s988_s26 }
  0x13   : > { %1347 = sst [smem:[#allocation17_spill]] %s988_s26  ;;  %s1328_s30 = sadd.s32 4294967295, %s992_s27  }
  0x14   : > { %p66_p1 = scmp.eq.s32.totalorder %s992_s27, 0  ;;  %s1385_s28 = smov (%p41_p0, %s39_s28), 0 }
  0x15   : > { %1348 = sst [smem:[#allocation18_spill]] %s1385_s28  ;;  %s1387_s29 = smov (!%p41_p0, %s43_s29), %s988_s26 }
  0x16   : > { %p1090_p2 = scmp.eq.s32.totalorder %s1328_s30, 0  ;;  %s82_s6 = ssub.s32 %s984_s25, %s1385_s28 }
  0x17   : > { %p45_p3 = scmp.ge.s32.totalorder %s1387_s29, 3  ;;  %p93_p4 = scmp.ne.s32.totalorder %s960_s20, %s956_s19 }
  0x18   : > { %p99_p5 = scmp.ne.s32.totalorder %s956_s19, %s952_s18  ;;  %s86_s7 = sadd.s32 1, %s960_s20 }
  0x19   : > { %s1389_s29 = smov (%p45_p3, %s1387_s29), 0  ;;  %p1113_p7 = por %p93_p4, %p66_p1 }
  0x1a   : > { %1350 = sst [smem:[#allocation19_spill]] %s1389_s29  ;;  %p1104_p6 = por %p99_p5, %p1090_p2 }
  0x1b   : > { %s607_s9 = sshll.u32 %s1389_s29, 3  ;;  %s81_s10 = ssub.s32 %s988_s26, %s1389_s29 }
  0x1c   : > { %s1351_s8 = scalar_select %p1104_p6, 1, 0 }
  0x1d   : > { %s83_s11 = sor.u32 %s82_s6, %s81_s10  ;;  %s1118_s13 = sadd.s32 %s607_s9, %s1385_s28 }
  0x1e   : > { %p84_p8 = scmp.eq.s32.totalorder %s83_s11, 0  ;;  %p1332_p9 = scmp.lt.s32.totalorder %s992_s27, 24 }
  0x1f   : > { %s207_s15 = sand.u32 1, %s992_s27   ;;  %s1336_s16 = sand.u32 1, %s960_s20  }
  0x20   : > { %s1122_s14 = scalar_select %p84_p8, %s960_s20, %s86_s7  }
  0x21   : > { %s614_s17 = sshll.u32 %s1336_s16, 7  ;;  %s615_s18 = sshll.u32 %s984_s25, 4 }
  0x22   : > { %1353 = sst [smem:[#allocation20_spill]] %s1122_s14  ;;  %s616_s6 = sshll.u32 %s988_s26, 7 }
  0x23   : > { %s217_s10 = sadd.s32 %s616_s6, %s615_s18  ;;  %s211_s30 = scalar_lea.vmem [#allocation6], %s614_s17 }
  0x24   : > { %s220_s29 = sshll.u32 %s211_s30, 4  ;;  %s617_s4 = sshll.u32 %s217_s10, 7  ;;  %s221_s29 = int_to_ptr.vmem [resolvable:$true] %s220_s29 }
  0x25   : > { %s1354_s2 = sld [smem:[#allocation21_spill]]  ;;  %p1137_p10 = pnand %p1332_p9, %p1113_p7 }
  0x26   : > { %p620_p11 = scmp.ge.s32.totalorder %s992_s27, 1  ;;  %p247_p12 = scmp.lt.s32.totalorder %s992_s27, 25 }
  0x27   : > { %s1143_s11 = scalar_lea.sflag [#allocation7], %s207_s15  ;;  %p814_p13 = pneg %p1137_p10 }
  0x28   : > { %s825_s30 = scalar_lea.vmem %s221_s29, 2048 }
  0x29   : > { %p826_p0 = scmp.ne.s32.totalorder %s221_s29, %s825_s30 }
  0x2b   : > { %s219_s28 = scalar_lea.hbm %s1354_s2, %s617_s4  ;;  %p828_p3 = pnand %p826_p0, %p814_p13 }
  0x2c   : > { %s995_s4 = smov [#allocation6]  }
  0x2d   : > { %p829_p4 = pneg %p828_p3  ;;  %s830_s0 = sshll.u32 %s995_s4, 4  ;;  %s831_s0 = int_to_ptr.vmem [resolvable:$false] %s830_s0 }
  0x2e   : > { %s832_s12 = scalar_lea.vmem %s831_s0, 4096  ;;  %p833_p5 = scmp.lt.s32.totalorder %s221_s29, %s831_s0 }
  0x2f   : > { %p834_p7 = scmp.lt.s32.totalorder %s832_s12, %s825_s30 }
  0x31   : > { %p835_p8 = por %p834_p7, %p833_p5 }
  0x33   : > { %p836_p9 = pnand %p835_p8, %p829_p4 }
  0x35   : > { %839 = shalt.err (!%p836_p9)
}
  0x36   : > { %s1333_s17 = smov 128   ;;  %s1334_s15 = smov 8  }
  0x37   : > { %708 = dma.hbm_to_vmem [thread:$0]  (!%p1137_p10), %s219_s28, 2048, %s221_s29, %s1143_s11, %s1333_s17, %s1333_s17, %s1334_s15  }
  0x38   : > { %p1160_p9 = pnand %p620_p11, %p247_p12  ;;  %s52_s6 = sld [smem:[#allocation3 + %s1118_s13]] }
  0x39   : > { %s606_s10 = sshll.u32 %s988_s26, 3  ;;  %p65_p0 = scmp.ne.s32.totalorder %s972_s23, %s968_s22 }
  0x3a   : > { %s1356_s18 = scalar_select %p1160_p9, 1, 0 }
  0x3b   : > { %s48_s9 = sadd.s32 %s984_s25, %s606_s10  ;;  %p71_p3 = scmp.ne.s32.totalorder %s968_s22, %s964_s21 }
  0x3c   : > { %s49_s30 = sld [smem:[#allocation3 + %s48_s9]]  ;;  %p67_p4 = por %p66_p1, %p65_p0 }
  0x3d   : > { %s1335_s4 = sand.u32 1, %s972_s23   ;;  %p1176_p5 = por %p1090_p2, %p71_p3 }
  0x3e   : > { %s610_s29 = sshll.u32 %s1335_s4, 4  ;;  %s58_s13 = sadd.s32 1, %s972_s23 }
  0x3f   : > { %s1357_s28 = scalar_select %p1176_p5, 1, 0 }
  0x40   : > { %p1358_p11 = scmp.lt.s32.totalorder %s992_s27, 24  ;;  %s619_s5 = sshll.u32 %s48_s9, 4 }
  0x41   : > { %s692_s12 = scalar_select %p67_p4, [#allocation3], [#allocation9] }
  0x42   : > { %p1185_p12 = pnand %p1358_p11, %p67_p4  ;;  %s53_s10 = ssub.s32 %s49_s30, %s52_s6 }
  0x43   : > { %p56_p7 = scmp.eq.s32.totalorder %s53_s10, 0  ;;  %p1360_p1 = pmov %p1358_p11 }
  0x44   : > { %s693_s21 = scalar_select %p67_p4, %s48_s9, 0 }
  0x45   : > { %s1190_s17 = scalar_select %p56_p7, %s972_s23, %s58_s13  }
  0x46   : > { %s1391_s12 = smov (!%p1360_p1, %s692_s12), [#allocation10]  ;;  %p1361_p2 = pmov %p1360_p1 }
  0x47   : > { %s240_s2 = scalar_lea.hbm %s1326_s3, %s619_s5  ;;  %s1362_s26 = sand.u32 1, %s960_s20  }
  0x48   : > { %s1393_s21 = smov (!%p1361_p2, %s693_s21), 0  ;;  %s233_s25 = scalar_lea.vmem [#allocation8], %s1362_s26 }
  0x49   : > { %s188_s15 = sld [smem:[%s1391_s12 + %s1393_s21]]  ;;  %s242_s14 = sshll.u32 %s233_s25, 4  ;;  %s243_s14 = int_to_ptr.vmem [resolvable:$true] %s242_s14 }
  0x4a   : > { %s185_s24 = scalar_lea.vmem [#allocation4], %s610_s29  ;;  %s853_s30 = scalar_lea.vmem %s243_s14, 16 }
  0x4b   : > { %s197_s6 = sshll.u32 %s185_s24, 4  ;;  %p854_p8 = scmp.ne.s32.totalorder %s243_s14, %s853_s30  ;;  %s1207_s6 = int_to_ptr.vmem [resolvable:$true] %s197_s6 }
  0x4c   : > { %s998_s13 = smov [#allocation8]  }
  0x4d   : > { %p856_p0 = pnand %p854_p8, %p814_p13  ;;  %s858_s10 = sshll.u32 %s998_s13, 4  ;;  %s859_s10 = int_to_ptr.vmem [resolvable:$false] %s858_s10 }
  0x4e   : > { %s860_s9 = scalar_lea.vmem %s859_s10, 32  ;;  %p861_p4 = scmp.lt.s32.totalorder %s243_s14, %s859_s10 }
  0x4f   : > { %p857_p3 = pneg %p856_p0  ;;  %p862_p11 = scmp.lt.s32.totalorder %s860_s9, %s853_s30 }
  0x51   : > { %p863_p7 = por %p862_p11, %p861_p4 }
  0x53   : > { %p864_p1 = pnand %p863_p7, %p857_p3 }
  0x55   : > { %867 = shalt.err (!%p864_p1)
}
  0x56   : > { %711 = dma.hbm_to_vmem [thread:$0]  (!%p1137_p10), %s240_s2, 16, %s243_s14, %s1143_s11  }
  0x57   : > { %s631_s24 = sshll.u32 %s188_s15, 8  ;;  %s1363_s4 = sand.u32 1, %s972_s23  }
  0x58   : > { %s1212_s16 = scalar_lea.hbm %s1324_s1, %s631_s24  ;;  %s1216_s29 = scalar_lea.sflag [#allocation5], %s1363_s4 }
  0x59   : > { %s868_s12 = scalar_lea.hbm %s1212_s16, 256  ;;  %p870_p2 = pneg %p1185_p12 }
  0x5a   : > { %p869_p13 = scmp.ne.s32.totalorder %s1212_s16, %s868_s12  ;;  %s873_s7 = scalar_lea.hbm %s1324_s1, 768 }
  0x5b   : > { %p874_p0 = scmp.lt.s32.totalorder %s1212_s16, %s1324_s1  ;;  %p875_p3 = scmp.lt.s32.totalorder %s873_s7, %s868_s12 }
  0x5c   : > { %p871_p8 = pnand %p870_p2, %p869_p13 }
  0x5d   : > { %p876_p4 = por %p875_p3, %p874_p0 }
  0x5e   : > { %p872_p10 = pneg %p871_p8 }
  0x60   : > { %p877_p11 = pnand %p876_p4, %p872_p10 }
  0x62   : > { %880 = shalt.err (!%p877_p11)
}
  0x63   : > { %s881_s21 = scalar_lea.vmem %s1207_s6, 256  ;;  %s999_s5 = smov [#allocation4]  }
  0x64   : > { %p882_p7 = scmp.ne.s32.totalorder %s1207_s6, %s881_s21  ;;  %s886_s30 = sshll.u32 %s999_s5, 4  ;;  %s887_s30 = int_to_ptr.vmem [resolvable:$false] %s886_s30 }
  0x65   : > { %s888_s13 = scalar_lea.vmem %s887_s30, 512  ;;  %p889_p8 = scmp.lt.s32.totalorder %s1207_s6, %s887_s30 }
  0x66   : > { %p884_p1 = pnand %p882_p7, %p870_p2  ;;  %p890_p6 = scmp.lt.s32.totalorder %s888_s13, %s881_s21 }
  0x68   : > { %p885_p13 = pneg %p884_p1  ;;  %p891_p5 = por %p890_p6, %p889_p8 }
  0x6a   : > { %p892_p9 = pnand %p891_p5, %p885_p13 }
  0x6c   : > { %895 = shalt.err (!%p892_p9)
}
  0x6d   : > { %s1364_s10 = smov 8   ;;  %s1365_s9 = smov 128  }
  0x6e   : > { %705 = dma.hbm_to_vmem [thread:$0]  (!%p1185_p12), %s1212_s16, 256, %s1207_s6, %s1216_s29, %s1365_s9, %s1365_s9, %s1364_s10  }
  0x6f   : > { %p1366_p2 = scmp.ne.s32.totalorder %s1356_s18, 0 }
  0x70   : > { %s253_s24 = sand.u32 (!%p1366_p2), 1, %s968_s22   ;;  %p1367_p6 = scmp.ne.s32.totalorder (!%p1366_p2), %s1357_s28, 0 }
  0x71   : > { %251 = sbr.rel (%p1366_p2) target bundleno = 358 (0x166), region = 32  ;;  %s1243_s25 = sshll.u32 (!%p1366_p2), %s253_s24, 4 }
  0x72   : > { %s254_s26 = scalar_lea.sflag (!%p1366_p2), [#allocation5], %s253_s24  ;;  %s257_s4 = scalar_lea.vmem (!%p1366_p2), [#allocation4], %s1243_s25 }
  0x76   : > { %943 = dma.done.wait (%p1367_p6), %s254_s26, 256  }
  0x77   : > { %945 = vsyncadd (%p1367_p6), %s254_s26, 4294967040  ;;  %s1368_s0 = sadd.s32 4294967295, %s992_s27   ;;  %s264_s6 = sand.u32 1, %s956_s19  }
  0x78   : > { %s262_s18 = sand.u32 1, %s1368_s0   ;;  %s622_s16 = sshll.u32 %s264_s6, 7 }
  0x79   : > { %s263_s29 = scalar_lea.sflag [#allocation7], %s262_s18  ;;  %s1255_s12 = scalar_lea.vmem [#allocation6], %s622_s16 }
  0x7a   : > { %p1369_p9 = scmp.ne.s32.totalorder %s1351_s8, 0 }
  0x7c   : > { %947 = dma.done.wait (%p1369_p9), %s263_s29, 2064  }
  0x7d   : > { %949 = vsyncadd (%p1369_p9), %s263_s29, 4294965232  ;;  %v349_v0 = vld [vmem:[%s1255_s12 + $0x78] sm:$0xff]  ;;  %v348_v1 = vld [vmem:[%s1255_s12 + $0x70] sm:$0xff]  ;;  %s1370_s8 = sld [smem:[#allocation15_spill]]  ;;  %s274_s11 = scalar_lea.vmem [#allocation8], %s264_s6 }
  0x7e   : > { %657 = vmatprep.subr.mxu0 %v349_v0  ;;  %v347_v2 = vld [vmem:[%s1255_s12 + $0x68] sm:$0xff]  ;;  %v346_v3 = vld [vmem:[%s1255_s12 + $0x60] sm:$0xff]  ;;  %v345_v5 = vld [vmem:[%s1255_s12 + $0x58] sm:$0xff]  ;;  %s1371_s28 = sld [smem:[#allocation14_spill]] }
  0x7f   : > { %658 = vmatpush3.msra.mxu0 %v349_v0  ;;  %v332_v4 = vld [vmem:[%s257_s4] sm:$0xff]  ;;  %v343_v7 = vld [vmem:[%s1255_s12 + $0x48] sm:$0xff]  ;;  %v341_v9 = vld [vmem:[%s1255_s12 + $0x38] sm:$0xff]  ;;  %s1372_s30 = sld [smem:[#allocation22_spill]] }
  0x80   : > { %659 = vmatprep.subr.mxu0 %v348_v1  ;;  %689 = vmatprep.mubr.f32.mxu0 %v332_v4  ;;  %v344_v6 = vld [vmem:[%s1255_s12 + $0x50] sm:$0xff]  ;;  %v342_v8 = vld [vmem:[%s1255_s12 + $0x40] sm:$0xff]  ;;  %v339_v11 = vld [vmem:[%s1255_s12 + $0x28] sm:$0xff] }
  0x81   : > { %660 = vmatpush3.msra.mxu0 %v348_v1  ;;  %v340_v10 = vld [vmem:[%s1255_s12 + $0x30] sm:$0xff]  ;;  %v338_v12 = vld [vmem:[%s1255_s12 + $0x20] sm:$0xff]  ;;  %v337_v13 = vld [vmem:[%s1255_s12 + $0x18] sm:$0xff] }
  0x82   : > { %661 = vmatprep.subr.mxu0 %v347_v2  ;;  %v336_v14 = vld [vmem:[%s1255_s12 + $0x10] sm:$0xff]  ;;  %v335_v15 = vld [vmem:[%s1255_s12 + $0x8] sm:$0xff]  ;;  %v334_v16 = vld [vmem:[%s1255_s12] sm:$0xff] }
  0x83   : > { %662 = vmatpush3.msra.mxu0 %v347_v2  ;;  %v333_v17 = vld [vmem:[%s257_s4 + $0x8] sm:$0xff]  ;;  %p319_p5 = scmp.lt.s32.totalorder %s1370_s8, 2  ;;  %v626_v19 = vld [vmem:[%s274_s11] ss:$0 sm:$0xff] }
  0x84   : > { %663 = vmatprep.subr.mxu0 %v346_v3  ;;  %p321_p12 = scmp.lt.s32.totalorder %s1371_s28, 7 }
  0x85   : > { %664 = vmatpush3.msra.mxu0 %v346_v3  ;;  %s1395_s8 = smov (!%p319_p5, %s1370_s8), 2 }
  0x86   : > { %665 = vmatprep.subr.mxu0 %v345_v5  ;;  %s1397_s28 = smov (!%p321_p12, %s1371_s28), 7  ;;  %s624_s14 = sshll.u32 %s1395_s8, 4 }
  0x87   : > { %666 = vmatpush3.msra.mxu0 %v345_v5  ;;  %s623_s2 = sshll.u32 %s1397_s28, 1 }
  0x88   : > { %667 = vmatprep.subr.mxu0 %v344_v6  ;;  %s328_s7 = sadd.s32 %s624_s14, %s623_s2 }
  0x89   : > { %668 = vmatpush3.msra.mxu0 %v344_v6  ;;  %s625_s15 = sshll.u32 %s328_s7, 2 }
  0x8a   : > { %669 = vmatprep.subr.mxu0 %v343_v7  ;;  %s330_s13 = scalar_lea.vmem %s1372_s30, %s625_s15 }
  0x8b   : > { %670 = vmatpush3.msra.mxu0 %v343_v7 }
  0x8c   : > { %671 = vmatprep.subr.mxu0 %v342_v8 }
  0x8d   : > { %672 = vmatpush3.msra.mxu0 %v342_v8 }
  0x8e   : > { %673 = vmatprep.subr.mxu0 %v341_v9 }
  0x8f   : > { %674 = vmatpush3.msra.mxu0 %v341_v9 }
  0x90   : > { %675 = vmatprep.subr.mxu0 %v340_v10 }
  0x91   : > { %676 = vmatpush3.msra.mxu0 %v340_v10 }
  0x92   : > { %677 = vmatprep.subr.mxu0 %v339_v11 }
  0x93   : > { %678 = vmatpush3.msra.mxu0 %v339_v11 }
  0x94   : > { %679 = vmatprep.subr.mxu0 %v338_v12 }
  0x95   : > { %680 = vmatpush3.msra.mxu0 %v338_v12 }
  0x96   : > { %681 = vmatprep.subr.mxu0 %v337_v13 }
  0x97   : > { %682 = vmatpush3.msra.mxu0 %v337_v13 }
  0x98   : > { %683 = vmatprep.subr.mxu0 %v336_v14 }
  0x99   : > { %684 = vmatpush3.msra.mxu0 %v336_v14 }
  0x9a   : > { %685 = vmatprep.subr.mxu0 %v335_v15 }
  0x9b   : > { %686 = vmatpush3.msra.mxu0 %v335_v15 }
  0x9c   : > { %687 = vmatprep.subr.mxu0 %v334_v16 }
  0x9d   : > { %688 = vmatpush3.msra.mxu0 %v334_v16 }
  0x9e   : > { %690 = vmatmul.mubr.f32.vlgmr.msra.gmra.mxu0 %v333_v17 }
 0x15e   : > { %v691_v18 = vpop.f32.mrf.mxu0 }
 0x15f   : > { %v429_v21 = vadd.f32 %v691_v18, %v626_v19 }
 0x160   : > { %v423_v20 = vpop.f32.mrf.mxu0 }
 0x161   : > { %v424_v22 = vadd.f32 %v626_v19, %v423_v20 }
 0x163   : > { %v637_v23 = vpack.c.bf16 %v429_v21, %v424_v22 }
 0x165   : > { %638 = vst [vmem:[%s330_s13] sm:$0xff] %v637_v23  }
 0x166 PF: > { %s24_s27 = sadd.s32 1, %s992_s27   ;;  %s1373_s10 = sld [smem:[#allocation20_spill]] }
 0x167   : > { %p21_p10 = scmp.ge.s32.totalorder %s24_s27, 26   ;;  %s1374_s0 = sld [smem:[#allocation16_spill]] }
 0x168   : > { %s1375_s24 = sld [smem:[#allocation17_spill]]  ;;  %s1378_s18 = smov %s956_s19 }
 0x169   : > { %s1376_s25 = sld [smem:[#allocation18_spill]]  ;;  %s1379_s19 = smov %s960_s20 }
 0x16a   : > { %s1377_s26 = sld [smem:[#allocation19_spill]]  ;;  %s1381_s21 = smov %s968_s22 }
 0x16b   : > { %s1382_s22 = smov %s972_s23  ;;  %s1383_s23 = smov %s1190_s17 }
 0x16c   : > { %s1380_s20 = smov %s1373_s10  ;;  %23 = sbr.rel (!%p21_p10) target bundleno = 16 (0x10), region = 96 }
 0x171   :  { %480 = vsyncpa [#allocation5], 1 }
 0x172   :  { %482 = vsyncpa [#allocation5 + $0x1], 1 }
 0x173   :  { %483 = vsyncpa [#allocation7], 1 }
 0x174   :  { %485 = vsyncpa [#allocation7 + $0x1], 1 }

// kernel: sage_conv2_forward.6
= control target key start
LH: loop header
LB: loop body
LE: loop exit
PB: predicated region body
PF: predicated region fallthrough
CT: control target
= control target key end

     0   :  { %s868_s0 = inlined_call_operand.vmem [shape: s32[16], index: 0, kind: input, shape index: {}]   ;;  %s869_s1 = inlined_call_operand.vmem [shape: f32[3,16,128], index: 1, kind: input, shape index: {}]   ;;  %s870_s2 = inlined_call_operand.vmem [shape: f32[2,8,128,128], index: 2, kind: input, shape index: {}]   ;;  %s871_s3 = inlined_call_operand.vmem [shape: f32[2,8,1,128], index: 3, kind: input, shape index: {}]   ;;  %s872_s4 = inlined_call_operand.vmem [shape: bf16[2,8,16,128], index: 4, kind: output, shape index: {}]  }
   0x1   :  { %s9_s17 = sshll.u32 %s868_s0, 4  ;;  %s10_s17 = int_to_ptr.vmem [resolvable:$true] %s9_s17 }
   0x2   :  { %s696_s18 = scalar_lea.vmem %s10_s17, 16  ;;  %p701_p1 = scmp.lt.s32.totalorder %s10_s17, %s10_s17 }
   0x3   :  { %p697_p0 = scmp.ne.s32.totalorder %s10_s17, %s696_s18  ;;  %p702_p2 = scmp.lt.s32.totalorder %s696_s18, %s696_s18 }
   0x5   :  { %p703_p3 = por %p702_p2, %p701_p1 }
   0x7   :  { %p704_p4 = pnand %p703_p3, %p697_p0 }
   0x9   :  { %707 = shalt.err (!%p704_p4)  }
   0xa   :  { %s750_s19 = smov [#allocation3]  }
   0xb   :  { %12 = dma.vmem_to_smem %s10_s17, 16, %s750_s19, [#allocation2] }
   0xc   :  { %728 = dma.done.wait [#allocation2], 16 }
   0xd   :  { %729 = vsyncadd [#allocation2], 4294967280 }
   0xe   :  { %14 = sfence }
   0xf   :  { %s779_s20 = smov 0   ;;  %s781_s21 = smov 0  }
  0x10   :  { %s783_s22 = smov 0   ;;  %s785_s0 = smov 0  }
  0x11   :  { %s787_s23 = smov 0  }
  0x12 LB: > { %s35_s24 = sadd.s32 1, %s740_s22  ;;  %s39_s25 = sadd.s32 1, %s744_s0  ;;  %s748_s23 = sphi %s787_s23, %s20_s23   ;;  %s744_s0 = sphi %s785_s0, %s876_s0   ;;  %s740_s22 = sphi %s783_s22, %s875_s22   ;;  %s736_s21 = sphi %s781_s21, %s874_s21   ;;  %s732_s20 = sphi %s779_s20, %s873_s20  }
  0x13   : > { %p37_p5 = scmp.ge.s32.totalorder %s35_s24, 8  ;;  %p578_p6 = scmp.ge.s32.totalorder %s748_s23, 1 }
  0x14   : > { %p216_p7 = scmp.lt.s32.totalorder %s748_s23, 17 }
  0x15   : > { %s878_s24 = smov (%p37_p5, %s35_s24), 0  ;;  %s880_s25 = smov (!%p37_p5, %s39_s25), %s744_s0 }
  0x16   : > { %p217_p8 = pnand %p578_p6, %p216_p7  ;;  %p41_p9 = scmp.ge.s32.totalorder %s880_s25, 2 }
  0x17   : > { %p287_p10 = scmp.lt.s32.totalorder (!%p217_p8), %s736_s21, 1  ;;  %p289_p11 = scmp.lt.s32.totalorder (!%p217_p8), %s732_s20, 7 }
  0x18   : > { %s882_s25 = smov (%p41_p9, %s880_s25), 0  ;;  %220 = sbr.rel (%p217_p8) target bundleno = 269 (0x10d), region = 32 }
  0x19   : > { %s579_s26 = sshll.u32 (!%p217_p8), %s736_s21, 3 }
  0x1a   : > { %s272_s29 = sadd.s32 (!%p217_p8), %s732_s20, %s579_s26 }
  0x1b   : > { %s273_s5 = sld [smem:[#allocation3 + %s272_s29]] (!%p217_p8) }
  0x1d   : > { %s884_s21 = smov (!%p287_p10, %s736_s21), 1 }
  0x1e   : > { %s811_s27 = scalar_select %p289_p11, %s732_s20, 7 }
  0x1f   : > { %s583_s28 = sshll.u32 %s884_s21, 7  ;;  %s585_s15 = sshll.u32 %s884_s21, 3 }
  0x20   : > { %s582_s30 = sshll.u32 %s811_s27, 4  ;;  %s301_s16 = sadd.s32 %s585_s15, %s811_s27 }
  0x21   : > { %s293_s6 = sadd.s32 %s583_s28, %s582_s30  ;;  %p275_p12 = scmp.lt.s32.totalorder %s273_s5, 2 }
  0x22   : > { %s584_s7 = sshll.u32 %s293_s6, 3  ;;  %s586_s17 = sshll.u32 %s811_s27, 1 }
  0x23   : > { %s818_s10 = scalar_lea.vmem %s870_s2, %s584_s7  ;;  %s886_s5 = smov (!%p275_p12, %s273_s5), 2 }
  0x24   : > { %v334_v0 = vld [vmem:[%s818_s10 + $0x78] sm:$0xff]  ;;  %v333_v1 = vld [vmem:[%s818_s10 + $0x70] sm:$0xff]  ;;  %v332_v2 = vld [vmem:[%s818_s10 + $0x68] sm:$0xff]  ;;  %s594_s11 = sshll.u32 %s886_s5, 4  ;;  %s587_s18 = sshll.u32 %s884_s21, 4 }
  0x25   : > { %620 = vmatprep.subr.mxu0 %v334_v0  ;;  %v331_v3 = vld [vmem:[%s818_s10 + $0x60] sm:$0xff]  ;;  %v330_v4 = vld [vmem:[%s818_s10 + $0x58] sm:$0xff]  ;;  %s828_s14 = scalar_lea.vmem %s869_s1, %s594_s11  ;;  %v329_v5 = vld [vmem:[%s818_s10 + $0x50] sm:$0xff]  ;;  %s302_s26 = scalar_lea.vmem %s871_s3, %s301_s16 }
  0x26   : > { %621 = vmatpush3.msra.mxu0 %v334_v0  ;;  %v317_v6 = vld [vmem:[%s828_s14] sm:$0xff]  ;;  %v328_v7 = vld [vmem:[%s818_s10 + $0x48] sm:$0xff]  ;;  %v326_v9 = vld [vmem:[%s818_s10 + $0x38] sm:$0xff]  ;;  %s313_s28 = sadd.s32 %s587_s18, %s586_s17 }
  0x27   : > { %622 = vmatprep.subr.mxu0 %v333_v1  ;;  %652 = vmatprep.mubr.f32.mxu0 %v317_v6  ;;  %v327_v8 = vld [vmem:[%s818_s10 + $0x40] sm:$0xff]  ;;  %v325_v10 = vld [vmem:[%s818_s10 + $0x30] sm:$0xff]  ;;  %v324_v11 = vld [vmem:[%s818_s10 + $0x28] sm:$0xff]  ;;  %s588_s29 = sshll.u32 %s313_s28, 2 }
  0x28   : > { %623 = vmatpush3.msra.mxu0 %v333_v1  ;;  %v323_v12 = vld [vmem:[%s818_s10 + $0x20] sm:$0xff]  ;;  %v322_v13 = vld [vmem:[%s818_s10 + $0x18] sm:$0xff]  ;;  %v321_v14 = vld [vmem:[%s818_s10 + $0x10] sm:$0xff]  ;;  %s315_s6 = scalar_lea.vmem %s872_s4, %s588_s29 }
  0x29   : > { %624 = vmatprep.subr.mxu0 %v332_v2  ;;  %v320_v15 = vld [vmem:[%s818_s10 + $0x8] sm:$0xff]  ;;  %v319_v16 = vld [vmem:[%s818_s10] sm:$0xff] }
  0x2a   : > { %625 = vmatpush3.msra.mxu0 %v332_v2  ;;  %v318_v17 = vld [vmem:[%s828_s14 + $0x8] sm:$0xff]  ;;  %v589_v19 = vld [vmem:[%s302_s26] ss:$0 sm:$0xff] }
  0x2b   : > { %626 = vmatprep.subr.mxu0 %v331_v3 }
  0x2c   : > { %627 = vmatpush3.msra.mxu0 %v331_v3 }
  0x2d   : > { %628 = vmatprep.subr.mxu0 %v330_v4 }
  0x2e   : > { %629 = vmatpush3.msra.mxu0 %v330_v4 }
  0x2f   : > { %630 = vmatprep.subr.mxu0 %v329_v5 }
  0x30   : > { %631 = vmatpush3.msra.mxu0 %v329_v5 }
  0x31   : > { %632 = vmatprep.subr.mxu0 %v328_v7 }
  0x32   : > { %633 = vmatpush3.msra.mxu0 %v328_v7 }
  0x33   : > { %634 = vmatprep.subr.mxu0 %v327_v8 }
  0x34   : > { %635 = vmatpush3.msra.mxu0 %v327_v8 }
  0x35   : > { %636 = vmatprep.subr.mxu0 %v326_v9 }
  0x36   : > { %637 = vmatpush3.msra.mxu0 %v326_v9 }
  0x37   : > { %638 = vmatprep.subr.mxu0 %v325_v10 }
  0x38   : > { %639 = vmatpush3.msra.mxu0 %v325_v10 }
  0x39   : > { %640 = vmatprep.subr.mxu0 %v324_v11 }
  0x3a   : > { %641 = vmatpush3.msra.mxu0 %v324_v11 }
  0x3b   : > { %642 = vmatprep.subr.mxu0 %v323_v12 }
  0x3c   : > { %643 = vmatpush3.msra.mxu0 %v323_v12 }
  0x3d   : > { %644 = vmatprep.subr.mxu0 %v322_v13 }
  0x3e   : > { %645 = vmatpush3.msra.mxu0 %v322_v13 }
  0x3f   : > { %646 = vmatprep.subr.mxu0 %v321_v14 }
  0x40   : > { %647 = vmatpush3.msra.mxu0 %v321_v14 }
  0x41   : > { %648 = vmatprep.subr.mxu0 %v320_v15 }
  0x42   : > { %649 = vmatpush3.msra.mxu0 %v320_v15 }
  0x43   : > { %650 = vmatprep.subr.mxu0 %v319_v16 }
  0x44   : > { %651 = vmatpush3.msra.mxu0 %v319_v16 }
  0x45   : > { %653 = vmatmul.mubr.f32.vlgmr.msra.gmra.mxu0 %v318_v17 }
 0x105   : > { %v654_v18 = vpop.f32.mrf.mxu0 }
 0x106   : > { %v414_v21 = vadd.f32 %v654_v18, %v589_v19 }
 0x107   : > { %v408_v20 = vpop.f32.mrf.mxu0 }
 0x108   : > { %v409_v22 = vadd.f32 %v589_v19, %v408_v20 }
 0x10a   : > { %v600_v23 = vpack.c.bf16 %v414_v21, %v409_v22 }
 0x10c   : > { %601 = vst [vmem:[%s315_s6] sm:$0xff] %v600_v23  }
 0x10d PF: > { %s20_s23 = sadd.s32 1, %s748_s23   ;;  %s873_s20 = smov %s740_s22 }
 0x10e   : > { %p17_p13 = scmp.ge.s32.totalorder %s20_s23, 18   ;;  %s874_s21 = smov %s744_s0 }
 0x10f   : > { %s875_s22 = smov %s878_s24  ;;  %s876_s0 = smov %s882_s25 }
 0x110   :  { %19 = sbr.rel (!%p17_p13) target bundleno = 18 (0x12), region = 68 }

// kernel: sage_conv2_forward.5
= control target key start
LH: loop header
LB: loop body
LE: loop exit
PB: predicated region body
PF: predicated region fallthrough
CT: control target
= control target key end

     0   :  { %s855_s0 = inlined_call_operand.vmem [shape: s32[3], index: 0, kind: input, shape index: {}]   ;;  %s856_s1 = inlined_call_operand.vmem [shape: bf16[3,7,16,16], index: 1, kind: input, shape index: {}]   ;;  %s857_s2 = inlined_call_operand.vmem [shape: bf16[3,8,16,128], index: 2, kind: input, shape index: {}, may-alias: {2,3}]   ;;  %s858_s3 = inlined_call_operand.vmem [shape: bf16[3,8,16,128], index: 3, kind: input, shape index: {}, may-alias: {2,3}]   ;;  %s859_s4 = inlined_call_operand.vmem [shape: f32[3,16,128], index: 4, kind: output, shape index: {}]  }
   0x1   :  { %s9_s17 = sshll.u32 %s855_s0, 4  ;;  %s10_s17 = int_to_ptr.vmem [resolvable:$true] %s9_s17 }
   0x2   :  { %s693_s18 = scalar_lea.vmem %s10_s17, 16  ;;  %p698_p1 = scmp.lt.s32.totalorder %s10_s17, %s10_s17 }
   0x3   :  { %p694_p0 = scmp.ne.s32.totalorder %s10_s17, %s693_s18  ;;  %p699_p2 = scmp.lt.s32.totalorder %s693_s18, %s693_s18 }
   0x5   :  { %p700_p3 = por %p699_p2, %p698_p1 }
   0x7   :  { %p701_p4 = pnand %p700_p3, %p694_p0 }
   0x9   :  { %704 = shalt.err (!%p701_p4)  }
   0xa   :  { %s747_s19 = smov [#allocation4]  }
   0xb   :  { %12 = dma.vmem_to_smem %s10_s17, 16, %s747_s19, [#allocation3] }
   0xc   :  { %725 = dma.done.wait [#allocation3], 16 }
   0xd   :  { %726 = vsyncadd [#allocation3], 4294967280 }
   0xe   :  { %14 = sfence }
   0xf   :  { %s778_s20 = smov 0   ;;  %s780_s21 = smov 0  }
  0x10   :  { %s782_s22 = smov 0   ;;  %s784_s0 = smov 0  }
  0x11   :  { %s786_s23 = smov 0  }
  0x12 LB: > { %s38_s24 = sadd.s32 1, %s737_s22  ;;  %s46_s25 = sadd.s32 1, %s741_s0  ;;  %s745_s23 = sphi %s786_s23, %s20_s23   ;;  %s741_s0 = sphi %s784_s0, %s863_s0   ;;  %s737_s22 = sphi %s782_s22, %s862_s22   ;;  %s733_s21 = sphi %s780_s21, %s861_s21   ;;  %s729_s20 = sphi %s778_s20, %s860_s20  }
  0x13   : > { %p40_p5 = scmp.ge.s32.totalorder %s38_s24, 7  ;;  %p602_p6 = scmp.ge.s32.totalorder %s745_s23, 1 }
  0x14   : > { %p231_p7 = scmp.lt.s32.totalorder %s745_s23, 22 }
  0x15   : > { %s865_s24 = smov (%p40_p5, %s38_s24), 0  ;;  %s867_s25 = smov (!%p40_p5, %s46_s25), %s741_s0 }
  0x16   : > { %p232_p8 = pnand %p602_p6, %p231_p7  ;;  %p48_p9 = scmp.ge.s32.totalorder %s867_s25, 3 }
  0x17   : > { %p294_p10 = scmp.lt.s32.totalorder (!%p232_p8), %s733_s21, 2  ;;  %p296_p11 = scmp.lt.s32.totalorder (!%p232_p8), %s729_s20, 6 }
  0x18   : > { %s869_s25 = smov (%p48_p9, %s867_s25), 0  ;;  %235 = sbr.rel (%p232_p8) target bundleno = 302 (0x12e), region = 32 }
  0x19   : > { %p313_p12 = scmp.lt.s32.totalorder (!%p232_p8), %s729_s20, 7  ;;  %p346_p13 = scmp.eq.s32.totalorder (!%p232_p8), %s729_s20, 0 }
  0x1d   : > { %s295_s26 = scalar_select %p294_p10, %s733_s21, 2 }
  0x1e   : > { %s297_s27 = scalar_select %p296_p11, %s729_s20, 6 }
  0x1f   : > { %s639_s28 = smul.u32 14, %s295_s26  ;;  %s606_s29 = sshll.u32 %s295_s26, 4 }
  0x20   : > { %s603_s30 = sshll.u32 %s297_s27, 1  ;;  %s622_s5 = sshll.u32 %s295_s26, 6 }
  0x21   : > { %s306_s6 = sadd.s32 %s639_s28, %s603_s30  ;;  %s534_s9 = scalar_lea.vmem %s858_s3, %s622_s5 }
  0x22   : > { %s604_s10 = sshll.u32 %s306_s6, 2  ;;  %s824_s13 = scalar_lea.vmem %s859_s4, %s606_s29  ;;  %v630_v0 = vld [vmem:[%s534_s9 + $0x38] sm:$0xff] (%p346_p13)  }
  0x23   : > { %s308_s16 = scalar_lea.vmem %s856_s1, %s604_s10  ;;  %v628_v1 = vunpack.c.l.bf16 (%p346_p13), %v630_v0  ;;  %v629_v2 = vunpack.c.h.bf16 (%p346_p13), %v630_v0 }
  0x24   : > { %s314_s17 = scalar_select %p313_p12, %s729_s20, 7 }
  0x25   : > { %351 = sbr.rel (!%p346_p13) target bundleno = 42 (0x2a), region = 36  ;;  %356 = vst [vmem:[#allocation2] sm:$0xff] (%p346_p13), %v628_v1  ;;  %357 = vst [vmem:[#allocation2 + $0x8] sm:$0xff] (%p346_p13), %v629_v2 }
  0x26   : > { %s605_s18 = sshll.u32 %s314_s17, 1 }
  0x27   : > { %s320_s19 = sadd.s32 %s606_s29, %s605_s18 }
  0x28   : > { %s607_s27 = sshll.u32 %s320_s19, 2 }
  0x29   : > { %s322_s30 = scalar_lea.vmem %s857_s2, %s607_s27 }
  0x2a PF: > { %s358_s5 = sld [smem:[#allocation4 + %s733_s21]] }
  0x30   : > { %p615_p0 = scmp.ge.s32.totalorder %s729_s20, %s358_s5 }
  0x32   : > { %362 = sbr.rel (%p615_p0) target bundleno = 260 (0x104), region = 40 }
  0x37   : > { %v683_v3 = vld [vmem:[%s322_s30] sm:$0xff]   ;;  %v748_v4 = vmov 0.0   ;;  %vm749_vm0 = vmmov 0   ;;  %vm380_vm1 = vcmask 130048   ;;  %v364_v10 = vld [vmem:[#allocation2 + $0x8] sm:$0xff] }
  0x38   : > { %633 = vmatprep.subr.bf16.mxu0 %v748_v4  ;;  %v684_v5 = vld [vmem:[%s308_s16] sm:$0xff]   ;;  %635 = vmatprep.mubr.msk.bf16.mxu0 %vm749_vm0, %v748_v4 }
  0x39   : > { %634 = vmatpush3.bf16.msra.mxu0 %v683_v3  ;;  %v363_v6 = vld [vmem:[#allocation2] sm:$0xff] }
  0x3c   : > { %636 = vmatmul.mubr.msk.bf16.vlgmr.msra.gmra.mxu0 %vm380_vm1, %v684_v5 }
  0xfc   : > { %v418_v7 = vpop.f32.mrf.mxu0 }
  0xfd   : > { %v425_v8 = vadd.f32 %v418_v7, %v363_v6 }
  0xfe   : > { %v637_v9 = vpop.f32.mrf.mxu0 }
  0xff   : > { %427 = vst [vmem:[#allocation2] sm:$0xff] %v425_v8 }
 0x100   : > { %v421_v11 = vpop.f32.mrf.mxu0 }
 0x101   : > { %v426_v12 = vadd.f32 %v421_v11, %v364_v10 }
 0x102   : > { %v638_v13 = vpop.f32.mrf.mxu0 }
 0x103   : > { %428 = vst [vmem:[#allocation2 + $0x8] sm:$0xff] %v426_v12 }
 0x104 PF: > { %p429_p1 = scmp.eq.s32.totalorder %s729_s20, 6 }
 0x106   : > { %433 = sbr.rel (!%p429_p1) target bundleno = 302 (0x12e), region = 44  ;;  %v434_v14 = vld [vmem:[#allocation2] sm:$0xff] (%p429_p1) }
 0x107   : > { %v436_v16 = vsub.f32 (%p429_p1), 0.0, %v434_v14 }
 0x109   : > { %v438_v18 = vmul.f32 (%p429_p1), 1.442695, %v436_v16 }
 0x10a   : > { %v435_v15 = vld [vmem:[#allocation2 + $0x8] sm:$0xff] (%p429_p1) }
 0x10b   : > { %v437_v17 = vsub.f32 0.0, %v435_v15  ;;  %685 = vpow2.f32 %v438_v18 }
 0x10d   : > { %v440_v19 = vmul.f32 1.442695, %v437_v17 }
 0x10f   : > { %687 = vpow2.f32 %v440_v19 }
 0x118   : > { %v686_v20 = vpop.eup %685 }
 0x119   : > { %v442_v22 = vadd.f32 1.0, %v686_v20 }
 0x11b   : > { %689 = vrcp.f32 %v442_v22 }
 0x11c   : > { %v688_v21 = vpop.eup %687 }
 0x11d   : > { %v443_v23 = vadd.f32 1.0, %v688_v21 }
 0x11f   : > { %691 = vrcp.f32 %v443_v23 }
 0x128   : > { %v690_v24 = vpop.eup %689 }
 0x129   : > { %446 = vst [vmem:[%s824_s13] sm:$0xff] %v690_v24 }
 0x12c   : > { %v692_v25 = vpop.eup %691 }
 0x12d   : > { %447 = vst [vmem:[%s824_s13 + $0x8] sm:$0xff] %v692_v25 }
 0x12e PF: > { %s20_s23 = sadd.s32 1, %s745_s23   ;;  %s860_s20 = smov %s737_s22 }
 0x12f   : > { %p17_p2 = scmp.ge.s32.totalorder %s20_s23, 23   ;;  %s861_s21 = smov %s741_s0 }
 0x130   : > { %s862_s22 = smov %s865_s24  ;;  %s863_s0 = smov %s869_s25 }
 0x131   :  { %19 = sbr.rel (!%p17_p2) target bundleno = 18 (0x12), region = 80 }

// kernel: sage_conv2_forward.7
= control target key start
LH: loop header
LB: loop body
LE: loop exit
PB: predicated region body
PF: predicated region fallthrough
CT: control target
= control target key end

     0   :  { %s855_s0 = inlined_call_operand.vmem [shape: s32[2], index: 0, kind: input, shape index: {}]   ;;  %s856_s1 = inlined_call_operand.vmem [shape: bf16[2,7,16,16], index: 1, kind: input, shape index: {}]   ;;  %s857_s2 = inlined_call_operand.vmem [shape: bf16[2,8,16,128], index: 2, kind: input, shape index: {}, may-alias: {2,3}]   ;;  %s858_s3 = inlined_call_operand.vmem [shape: bf16[2,8,16,128], index: 3, kind: input, shape index: {}, may-alias: {2,3}]   ;;  %s859_s4 = inlined_call_operand.vmem [shape: f32[2,16,128], index: 4, kind: output, shape index: {}]  }
   0x1   :  { %s9_s17 = sshll.u32 %s855_s0, 4  ;;  %s10_s17 = int_to_ptr.vmem [resolvable:$true] %s9_s17 }
   0x2   :  { %s693_s18 = scalar_lea.vmem %s10_s17, 16  ;;  %p698_p1 = scmp.lt.s32.totalorder %s10_s17, %s10_s17 }
   0x3   :  { %p694_p0 = scmp.ne.s32.totalorder %s10_s17, %s693_s18  ;;  %p699_p2 = scmp.lt.s32.totalorder %s693_s18, %s693_s18 }
   0x5   :  { %p700_p3 = por %p699_p2, %p698_p1 }
   0x7   :  { %p701_p4 = pnand %p700_p3, %p694_p0 }
   0x9   :  { %704 = shalt.err (!%p701_p4)  }
   0xa   :  { %s747_s19 = smov [#allocation4]  }
   0xb   :  { %12 = dma.vmem_to_smem %s10_s17, 16, %s747_s19, [#allocation3] }
   0xc   :  { %725 = dma.done.wait [#allocation3], 16 }
   0xd   :  { %726 = vsyncadd [#allocation3], 4294967280 }
   0xe   :  { %14 = sfence }
   0xf   :  { %s778_s20 = smov 0   ;;  %s780_s21 = smov 0  }
  0x10   :  { %s782_s22 = smov 0   ;;  %s784_s0 = smov 0  }
  0x11   :  { %s786_s23 = smov 0  }
  0x12 LB: > { %s38_s24 = sadd.s32 1, %s737_s22  ;;  %s46_s25 = sadd.s32 1, %s741_s0  ;;  %s745_s23 = sphi %s786_s23, %s20_s23   ;;  %s741_s0 = sphi %s784_s0, %s863_s0   ;;  %s737_s22 = sphi %s782_s22, %s862_s22   ;;  %s733_s21 = sphi %s780_s21, %s861_s21   ;;  %s729_s20 = sphi %s778_s20, %s860_s20  }
  0x13   : > { %p40_p5 = scmp.ge.s32.totalorder %s38_s24, 7  ;;  %p602_p6 = scmp.ge.s32.totalorder %s745_s23, 1 }
  0x14   : > { %p231_p7 = scmp.lt.s32.totalorder %s745_s23, 15 }
  0x15   : > { %s865_s24 = smov (%p40_p5, %s38_s24), 0  ;;  %s867_s25 = smov (!%p40_p5, %s46_s25), %s741_s0 }
  0x16   : > { %p232_p8 = pnand %p602_p6, %p231_p7  ;;  %p48_p9 = scmp.ge.s32.totalorder %s867_s25, 2 }
  0x17   : > { %p294_p10 = scmp.lt.s32.totalorder (!%p232_p8), %s733_s21, 1  ;;  %p296_p11 = scmp.lt.s32.totalorder (!%p232_p8), %s729_s20, 6 }
  0x18   : > { %s869_s25 = smov (%p48_p9, %s867_s25), 0  ;;  %235 = sbr.rel (%p232_p8) target bundleno = 302 (0x12e), region = 32 }
  0x19   : > { %p313_p12 = scmp.lt.s32.totalorder (!%p232_p8), %s729_s20, 7  ;;  %p346_p13 = scmp.eq.s32.totalorder (!%p232_p8), %s729_s20, 0 }
  0x1d   : > { %s295_s26 = scalar_select %p294_p10, %s733_s21, 1 }
  0x1e   : > { %s297_s27 = scalar_select %p296_p11, %s729_s20, 6 }
  0x1f   : > { %s639_s28 = smul.u32 14, %s295_s26  ;;  %s606_s29 = sshll.u32 %s295_s26, 4 }
  0x20   : > { %s603_s30 = sshll.u32 %s297_s27, 1  ;;  %s622_s5 = sshll.u32 %s295_s26, 6 }
  0x21   : > { %s306_s6 = sadd.s32 %s639_s28, %s603_s30  ;;  %s534_s9 = scalar_lea.vmem %s858_s3, %s622_s5 }
  0x22   : > { %s604_s10 = sshll.u32 %s306_s6, 2  ;;  %s824_s13 = scalar_lea.vmem %s859_s4, %s606_s29  ;;  %v630_v0 = vld [vmem:[%s534_s9 + $0x38] sm:$0xff] (%p346_p13)  }
  0x23   : > { %s308_s16 = scalar_lea.vmem %s856_s1, %s604_s10  ;;  %v628_v1 = vunpack.c.l.bf16 (%p346_p13), %v630_v0  ;;  %v629_v2 = vunpack.c.h.bf16 (%p346_p13), %v630_v0 }
  0x24   : > { %s314_s17 = scalar_select %p313_p12, %s729_s20, 7 }
  0x25   : > { %351 = sbr.rel (!%p346_p13) target bundleno = 42 (0x2a), region = 36  ;;  %356 = vst [vmem:[#allocation2] sm:$0xff] (%p346_p13), %v628_v1  ;;  %357 = vst [vmem:[#allocation2 + $0x8] sm:$0xff] (%p346_p13), %v629_v2 }
  0x26   : > { %s605_s18 = sshll.u32 %s314_s17, 1 }
  0x27   : > { %s320_s19 = sadd.s32 %s606_s29, %s605_s18 }
  0x28   : > { %s607_s27 = sshll.u32 %s320_s19, 2 }
  0x29   : > { %s322_s30 = scalar_lea.vmem %s857_s2, %s607_s27 }
  0x2a PF: > { %s358_s5 = sld [smem:[#allocation4 + %s733_s21]] }
  0x30   : > { %p615_p0 = scmp.ge.s32.totalorder %s729_s20, %s358_s5 }
  0x32   : > { %362 = sbr.rel (%p615_p0) target bundleno = 260 (0x104), region = 40 }
  0x37   : > { %v683_v3 = vld [vmem:[%s322_s30] sm:$0xff]   ;;  %v748_v4 = vmov 0.0   ;;  %vm749_vm0 = vmmov 0   ;;  %vm380_vm1 = vcmask 130048   ;;  %v364_v10 = vld [vmem:[#allocation2 + $0x8] sm:$0xff] }
  0x38   : > { %633 = vmatprep.subr.bf16.mxu0 %v748_v4  ;;  %v684_v5 = vld [vmem:[%s308_s16] sm:$0xff]   ;;  %635 = vmatprep.mubr.msk.bf16.mxu0 %vm749_vm0, %v748_v4 }
  0x39   : > { %634 = vmatpush3.bf16.msra.mxu0 %v683_v3  ;;  %v363_v6 = vld [vmem:[#allocation2] sm:$0xff] }
  0x3c   : > { %636 = vmatmul.mubr.msk.bf16.vlgmr.msra.gmra.mxu0 %vm380_vm1, %v684_v5 }
  0xfc   : > { %v418_v7 = vpop.f32.mrf.mxu0 }
  0xfd   : > { %v425_v8 = vadd.f32 %v418_v7, %v363_v6 }
  0xfe   : > { %v637_v9 = vpop.f32.mrf.mxu0 }
  0xff   : > { %427 = vst [vmem:[#allocation2] sm:$0xff] %v425_v8 }
 0x100   : > { %v421_v11 = vpop.f32.mrf.mxu0 }
 0x101   : > { %v426_v12 = vadd.f32 %v421_v11, %v364_v10 }
 0x102   : > { %v638_v13 = vpop.f32.mrf.mxu0 }
 0x103   : > { %428 = vst [vmem:[#allocation2 + $0x8] sm:$0xff] %v426_v12 }
 0x104 PF: > { %p429_p1 = scmp.eq.s32.totalorder %s729_s20, 6 }
 0x106   : > { %433 = sbr.rel (!%p429_p1) target bundleno = 302 (0x12e), region = 44  ;;  %v434_v14 = vld [vmem:[#allocation2] sm:$0xff] (%p429_p1) }
 0x107   : > { %v436_v16 = vsub.f32 (%p429_p1), 0.0, %v434_v14 }
 0x109   : > { %v438_v18 = vmul.f32 (%p429_p1), 1.442695, %v436_v16 }
 0x10a   : > { %v435_v15 = vld [vmem:[#allocation2 + $0x8] sm:$0xff] (%p429_p1) }
 0x10b   : > { %v437_v17 = vsub.f32 0.0, %v435_v15  ;;  %685 = vpow2.f32 %v438_v18 }
 0x10d   : > { %v440_v19 = vmul.f32 1.442695, %v437_v17 }
 0x10f   : > { %687 = vpow2.f32 %v440_v19 }
 0x118   : > { %v686_v20 = vpop.eup %685 }
 0x119   : > { %v442_v22 = vadd.f32 1.0, %v686_v20 }
 0x11b   : > { %689 = vrcp.f32 %v442_v22 }
 0x11c   : > { %v688_v21 = vpop.eup %687 }
 0x11d   : > { %v443_v23 = vadd.f32 1.0, %v688_v21 }
 0x11f   : > { %691 = vrcp.f32 %v443_v23 }
 0x128   : > { %v690_v24 = vpop.eup %689 }
 0x129   : > { %446 = vst [vmem:[%s824_s13] sm:$0xff] %v690_v24 }
 0x12c   : > { %v692_v25 = vpop.eup %691 }
 0x12d   : > { %447 = vst [vmem:[%s824_s13 + $0x8] sm:$0xff] %v692_v25 }
 0x12e PF: > { %s20_s23 = sadd.s32 1, %s745_s23   ;;  %s860_s20 = smov %s737_s22 }
 0x12f   : > { %p17_p2 = scmp.ge.s32.totalorder %s20_s23, 16   ;;  %s861_s21 = smov %s741_s0 }
 0x130   : > { %s862_s22 = smov %s865_s24  ;;  %s863_s0 = smov %s869_s25 }
 0x131   :  { %19 = sbr.rel (!%p17_p2) target bundleno = 18 (0x12), region = 80 }

</bundles_post_ra>
